<compile_context>
chip_gen: v7x
topology: tpu7x:2x2x1
jax: 0.10.0
libtpu: 0.0.40
codegen_flags: <defaults>
</compile_context>

<pallas_src>
import functools

import jax
import jax.numpy as jnp
from jax import lax
from jax.experimental import pallas as pl
from jax.experimental.pallas import tpu as pltpu


_ROW_SUB = 8    # rows per inner vector block (one f32 sublane group)
_CH_SUB = 8     # input channels reduced per inner step (sublane reduce width)
_LANE = 128     # lane width; C_out tile


def _fuzzy_mlp_kernel(hl_ref, hr_ref, wl_ref, wr_ref, bl_ref, br_ref,
                      ol_ref, or_ref, accl_ref, accr_ref):
    k = pl.program_id(2)
    nk = pl.num_programs(2)

    tm, tk = hl_ref.shape          # (row tile, C_in chunk)
    tn = wl_ref.shape[1]           # C_out tile (== 128)
    n_row = tm // _ROW_SUB
    n_ch = tk // _CH_SUB

    @pl.when(k == 0)
    def _():
        accl_ref[...] = jnp.zeros_like(accl_ref)
        accr_ref[...] = jnp.zeros_like(accr_ref)

    def row_body(r, carry):
        r0 = pl.multiple_of(r * _ROW_SUB, _ROW_SUB)
        a = hl_ref[pl.ds(r0, _ROW_SUB), :]     # (_ROW_SUB, tk)
        b = hr_ref[pl.ds(r0, _ROW_SUB), :]

        suml = jnp.zeros((_ROW_SUB, tn), jnp.float32)
        sumr = jnp.zeros((_ROW_SUB, tn), jnp.float32)

        # Static unroll over 8-channel chunks: rank-3 temporaries stay at
        # (_ROW_SUB, _CH_SUB, tn) = 8 vregs each; pairwise min/max keeps the
        # peak number of live corner products low.
        for c in range(n_ch):
            c0 = c * _CH_SUB
            ac = a[:, c0:c0 + _CH_SUB][:, :, None]     # (_ROW_SUB, _CH_SUB, 1)
            bc = b[:, c0:c0 + _CH_SUB][:, :, None]
            wlc = wl_ref[c0:c0 + _CH_SUB, :][None, :, :]   # (1, _CH_SUB, tn)
            wrc = wr_ref[c0:c0 + _CH_SUB, :][None, :, :]

            p1 = ac * wlc
            p2 = ac * wrc
            mn = jnp.minimum(p1, p2)
            mx = jnp.maximum(p1, p2)
            p3 = bc * wlc
            p4 = bc * wrc
            mn = jnp.minimum(mn, jnp.minimum(p3, p4))
            mx = jnp.maximum(mx, jnp.maximum(p3, p4))

            # C_in sits on the sublane axis -> XLU sublane reduce (VALU stays
            # the binding slot; XLU is otherwise idle).
            suml = suml + jnp.sum(mn, axis=1)
            sumr = sumr + jnp.sum(mx, axis=1)

        accl_ref[pl.ds(r0, _ROW_SUB), :] += suml
        accr_ref[pl.ds(r0, _ROW_SUB), :] += sumr
        return carry

    lax.fori_loop(0, n_row, row_body, 0)

    @pl.when(k == nk - 1)
    def _():
        ol_ref[...] = accl_ref[...] + bl_ref[...]
        or_ref[...] = accr_ref[...] + br_ref[...]


def _round_up(x, m):
    return ((x + m - 1) // m) * m


@functools.partial(jax.jit, static_argnames=("row_tile", "cin_tile"))
def fuzzy_mlp_forward(hl, hr, w_b, w_a, w_c, b_b, b_a, b_c,
                      *, row_tile=256, cin_tile=512):
    f32 = jnp.float32
    n, c_in = hl.shape
    c_out = w_b.shape[1]

    hl = hl.astype(f32)
    hr = hr.astype(f32)

    # Interval weight/bias construction hoisted out of the kernel (computed
    # once per call instead of once per grid step).
    w_l = (w_b - jnp.maximum(w_a, 0.0)).astype(f32)
    w_r = (w_b + jnp.maximum(w_c, 0.0)).astype(f32)
    b_l = (b_b - jnp.maximum(b_a, 0.0)).astype(f32)
    b_r = (b_b + jnp.maximum(b_c, 0.0)).astype(f32)

    # ---- Tiling -----------------------------------------------------------
    # Rows: multiples of 8 (sublane group), up to `row_tile` per grid step.
    n8 = _round_up(n, _ROW_SUB)
    tm = n8 if n8 <= row_tile else _round_up(row_tile, _ROW_SUB)
    n_pad = _round_up(n, tm)

    # C_in: whole (8-padded) axis in one grid step when small, otherwise
    # 128-channel chunks accumulated over an "arbitrary" grid axis.  (Block
    # lane dims must be a multiple of 128 or the full axis extent.)
    k8 = _round_up(c_in, _CH_SUB)
    tk = k8 if k8 <= cin_tile else _LANE
    k_pad = _round_up(k8, tk)

    # C_out: pad to lane width so intermediates and output stores are
    # lane-dense (no masked partial stores).
    co_pad = _round_up(c_out, _LANE)
    tn = _LANE

    # ---- Zero padding (zero rows/channels contribute exactly 0) ------------
    def pad2(x, rows, cols):
        return jnp.pad(x, ((0, rows - x.shape[0]), (0, cols - x.shape[1])))

    hl_p = pad2(hl, n_pad, k_pad)
    hr_p = pad2(hr, n_pad, k_pad)
    wl_p = pad2(w_l, k_pad, co_pad)
    wr_p = pad2(w_r, k_pad, co_pad)
    bl_p = pad2(b_l, 1, co_pad)
    br_p = pad2(b_r, 1, co_pad)

    grid = (n_pad // tm, co_pad // tn, k_pad // tk)

    row_spec = pl.BlockSpec((tm, tk), lambda i, j, k: (i, k))
    w_spec = pl.BlockSpec((tk, tn), lambda i, j, k: (k, j))
    b_spec = pl.BlockSpec((1, tn), lambda i, j, k: (0, j))
    out_spec = pl.BlockSpec((tm, tn), lambda i, j, k: (i, j))

    out_l_p, out_r_p = pl.pallas_call(
        _fuzzy_mlp_kernel,
        out_shape=(
            jax.ShapeDtypeStruct((n_pad, co_pad), f32),
            jax.ShapeDtypeStruct((n_pad, co_pad), f32),
        ),
        grid_spec=pltpu.PrefetchScalarGridSpec(
            num_scalar_prefetch=0,
            grid=grid,
            in_specs=[row_spec, row_spec, w_spec, w_spec, b_spec, b_spec],
            out_specs=[out_spec, out_spec],
            scratch_shapes=[pltpu.VMEM((tm, tn), f32),
                            pltpu.VMEM((tm, tn), f32)],
        ),
        compiler_params=pltpu.CompilerParams(
            dimension_semantics=("parallel", "parallel", "arbitrary")),
    )(hl_p, hr_p, wl_p, wr_p, bl_p, br_p)

    return out_l_p[:n, :c_out], out_r_p[:n, :c_out]


def _reference_forward(hl, hr, w_b, w_a, w_c, b_b, b_a, b_c):
    """Pure-JAX transcription of the PyTorch forward (for validation)."""
    w_l = w_b - jnp.maximum(w_a, 0.0)
    w_r = w_b + jnp.maximum(w_c, 0.0)
    b_l = b_b - jnp.maximum(b_a, 0.0)
    b_r = b_b + jnp.maximum(b_c, 0.0)
    p1 = hl[:, :, None] * w_l[None, :, :]
    p2 = hl[:, :, None] * w_r[None, :, :]
    p3 = hr[:, :, None] * w_l[None, :, :]
    p4 = hr[:, :, None] * w_r[None, :, :]
    stack = jnp.stack([p1, p2, p3, p4], axis=0)
    out_l = jnp.sum(jnp.min(stack, axis=0), axis=1) + b_l
    out_r = jnp.sum(jnp.max(stack, axis=0), axis=1) + b_r
    return out_l, out_r


def _run_case(key, n, c_in, c_out, **kw):
    keys = jax.random.split(key, 8)
    hl = jax.random.normal(keys[0], (n, c_in), jnp.float32)
    hr = hl + 0.1 * jnp.abs(jax.random.normal(keys[1], (n, c_in), jnp.float32))

    def u(k, shape):  # reset_parameters: U(0.02, 0.05)
        return jax.random.uniform(k, shape, jnp.float32, 0.02, 0.05)

    w_b = u(keys[2], (c_in, c_out))
    w_a = u(keys[3], (c_in, c_out))
    w_c = u(keys[4], (c_in, c_out))
    b_b = u(keys[5], (1, c_out))
    b_a = u(keys[6], (1, c_out))
    b_c = u(keys[7], (1, c_out))

    out_l, out_r = fuzzy_mlp_forward(hl, hr, w_b, w_a, w_c, b_b, b_a, b_c, **kw)
    jax.block_until_ready((out_l, out_r))

    ref_l, ref_r = _reference_forward(hl, hr, w_b, w_a, w_c, b_b, b_a, b_c)
    assert out_l.shape == (n, c_out) and out_r.shape == (n, c_out)
    assert jnp.allclose(out_l, ref_l, atol=1e-4, rtol=1e-4)
    assert jnp.allclose(out_r, ref_r, atol=1e-4, rtol=1e-4)


if __name__ == "__main__":
    key = jax.random.PRNGKey(0)
    k1, k2, k3 = jax.random.split(key, 3)

    # Tiny module-scale case (single grid step everywhere).
    _run_case(k1, 8, 32, 16)
    # Exercises N / C_in / C_out zero-padding and several row sub-blocks.
    _run_case(k2, 52, 45, 20)
    # Exercises multiple parallel row blocks + multi-step C_in accumulation.
    _run_case(k3, 300, 200, 24, row_tile=256, cin_tile=128)

    print("KERNEL_OK")
</pallas_src>

<mosaic_0001>
module attributes {stable_mosaic.version = 11 : i64} {
  func.func @_fuzzy_mlp_kernel(%arg0: i32, %arg1: i32, %arg2: i32, %arg3: memref<8x32xf32, #tpu.memory_space<vmem>>, %arg4: memref<8x32xf32, #tpu.memory_space<vmem>>, %arg5: memref<32x128xf32, #tpu.memory_space<vmem>>, %arg6: memref<32x128xf32, #tpu.memory_space<vmem>>, %arg7: memref<1x128xf32, #tpu.memory_space<vmem>>, %arg8: memref<1x128xf32, #tpu.memory_space<vmem>>, %arg9: memref<8x128xf32, #tpu.memory_space<vmem>>, %arg10: memref<8x128xf32, #tpu.memory_space<vmem>>, %arg11: memref<8x128xf32, #tpu.memory_space<vmem>>, %arg12: memref<8x128xf32, #tpu.memory_space<vmem>>) attributes {dimension_semantics = [#tpu.dimension_semantics<parallel>, #tpu.dimension_semantics<parallel>, #tpu.dimension_semantics<arbitrary>], iteration_bounds = array<i64: 1, 1, 1>, scalar_prefetch = 0 : i64, scratch_operands = 2 : i64, tpu.core_type = #tpu.core_type<tc>, window_params = [{transform_indices = @transform_0, window_bounds = array<i64: 8, 32>}, {transform_indices = @transform_1, window_bounds = array<i64: 8, 32>}, {transform_indices = @transform_2, window_bounds = array<i64: 32, 128>}, {transform_indices = @transform_3, window_bounds = array<i64: 32, 128>}, {transform_indices = @transform_4, window_bounds = array<i64: 1, 128>}, {transform_indices = @transform_5, window_bounds = array<i64: 1, 128>}, {transform_indices = @transform_6, window_bounds = array<i64: 8, 128>}, {transform_indices = @transform_7, window_bounds = array<i64: 8, 128>}]} {
    %c0_i32 = arith.constant 0 : i32
    %0 = arith.cmpi eq, %arg2, %c0_i32 : i32
    %1 = arith.extui %0 : i1 to i32
    %c0_i32_0 = arith.constant 0 : i32
    %2 = arith.cmpi ne, %1, %c0_i32_0 : i32
    scf.if %2 {
      %cst_31 = arith.constant 0.000000e+00 : f32
      %144 = vector.broadcast %cst_31 : f32 to vector<8x128xf32>
      %c0_32 = arith.constant 0 : index
      %c0_33 = arith.constant 0 : index
      %145 = vector.load %arg11[%c0_32, %c0_33] : memref<8x128xf32, #tpu.memory_space<vmem>>, vector<8x128xf32>
      tpu.vector_store %arg11[%c0_32, %c0_33], %144 {strides = array<i32>} : memref<8x128xf32, #tpu.memory_space<vmem>>, vector<8x128xf32>,
      %cst_34 = arith.constant 0.000000e+00 : f32
      %146 = vector.broadcast %cst_34 : f32 to vector<8x128xf32>
      %c0_35 = arith.constant 0 : index
      %c0_36 = arith.constant 0 : index
      %147 = vector.load %arg12[%c0_35, %c0_36] : memref<8x128xf32, #tpu.memory_space<vmem>>, vector<8x128xf32>
      tpu.vector_store %arg12[%c0_35, %c0_36], %146 {strides = array<i32>} : memref<8x128xf32, #tpu.memory_space<vmem>>, vector<8x128xf32>,
    } else {
    }
    %c0_i32_1 = arith.constant 0 : i32
    %c8_i32 = arith.constant 8 : i32
    %3 = arith.muli %c0_i32_1, %c8_i32 : i32
    %4 = tpu.assume_multiple %3, 8 : i32
    %5 = arith.index_cast %4 : i32 to index
    %c0 = arith.constant 0 : index
    %6 = vector.load %arg3[%5, %c0] : memref<8x32xf32, #tpu.memory_space<vmem>>, vector<8x32xf32>
    %7 = arith.index_cast %4 : i32 to index
    %c0_2 = arith.constant 0 : index
    %8 = vector.load %arg4[%7, %c0_2] : memref<8x32xf32, #tpu.memory_space<vmem>>, vector<8x32xf32>
    %cst = arith.constant 0.000000e+00 : f32
    %9 = vector.broadcast %cst : f32 to vector<8x128xf32>
    %cst_3 = arith.constant 0.000000e+00 : f32
    %10 = vector.broadcast %cst_3 : f32 to vector<8x128xf32>
    %11 = vector.extract_strided_slice %6 {offsets = [0, 0], sizes = [8, 8], strides = [1, 1]} : vector<8x32xf32> to vector<8x8xf32>
    %12 = vector.shape_cast %11 : vector<8x8xf32> to vector<8x8x1xf32>
    %13 = vector.extract_strided_slice %8 {offsets = [0, 0], sizes = [8, 8], strides = [1, 1]} : vector<8x32xf32> to vector<8x8xf32>
    %14 = vector.shape_cast %13 : vector<8x8xf32> to vector<8x8x1xf32>
    %c0_4 = arith.constant 0 : index
    %c0_5 = arith.constant 0 : index
    %15 = vector.load %arg5[%c0_4, %c0_5] : memref<32x128xf32, #tpu.memory_space<vmem>>, vector<8x128xf32>
    %16 = vector.shape_cast %15 : vector<8x128xf32> to vector<1x8x128xf32>
    %c0_6 = arith.constant 0 : index
    %c0_7 = arith.constant 0 : index
    %17 = vector.load %arg6[%c0_6, %c0_7] : memref<32x128xf32, #tpu.memory_space<vmem>>, vector<8x128xf32>
    %18 = vector.shape_cast %17 : vector<8x128xf32> to vector<1x8x128xf32>
    %19 = vector.broadcast %12 : vector<8x8x1xf32> to vector<8x8x128xf32>
    %20 = vector.broadcast %16 : vector<1x8x128xf32> to vector<8x8x128xf32>
    %21 = arith.mulf %19, %20 : vector<8x8x128xf32>
    %22 = vector.broadcast %12 : vector<8x8x1xf32> to vector<8x8x128xf32>
    %23 = vector.broadcast %18 : vector<1x8x128xf32> to vector<8x8x128xf32>
    %24 = arith.mulf %22, %23 : vector<8x8x128xf32>
    %25 = arith.minimumf %21, %24 : vector<8x8x128xf32>
    %26 = arith.maximumf %21, %24 : vector<8x8x128xf32>
    %27 = vector.broadcast %14 : vector<8x8x1xf32> to vector<8x8x128xf32>
    %28 = vector.broadcast %16 : vector<1x8x128xf32> to vector<8x8x128xf32>
    %29 = arith.mulf %27, %28 : vector<8x8x128xf32>
    %30 = vector.broadcast %14 : vector<8x8x1xf32> to vector<8x8x128xf32>
    %31 = vector.broadcast %18 : vector<1x8x128xf32> to vector<8x8x128xf32>
    %32 = arith.mulf %30, %31 : vector<8x8x128xf32>
    %33 = arith.minimumf %29, %32 : vector<8x8x128xf32>
    %34 = arith.minimumf %25, %33 : vector<8x8x128xf32>
    %35 = arith.maximumf %29, %32 : vector<8x8x128xf32>
    %36 = arith.maximumf %26, %35 : vector<8x8x128xf32>
    %cst_8 = arith.constant dense<0.000000e+00> : vector<8x128xf32>
    %37 = vector.multi_reduction <add>, %34, %cst_8 [1] : vector<8x8x128xf32> to vector<8x128xf32>
    %38 = arith.addf %9, %37 : vector<8x128xf32>
    %cst_9 = arith.constant dense<0.000000e+00> : vector<8x128xf32>
    %39 = vector.multi_reduction <add>, %36, %cst_9 [1] : vector<8x8x128xf32> to vector<8x128xf32>
    %40 = arith.addf %10, %39 : vector<8x128xf32>
    %41 = vector.extract_strided_slice %6 {offsets = [0, 8], sizes = [8, 8], strides = [1, 1]} : vector<8x32xf32> to vector<8x8xf32>
    %42 = vector.shape_cast %41 : vector<8x8xf32> to vector<8x8x1xf32>
    %43 = vector.extract_strided_slice %8 {offsets = [0, 8], sizes = [8, 8], strides = [1, 1]} : vector<8x32xf32> to vector<8x8xf32>
    %44 = vector.shape_cast %43 : vector<8x8xf32> to vector<8x8x1xf32>
    %c8 = arith.constant 8 : index
    %c0_10 = arith.constant 0 : index
    %45 = vector.load %arg5[%c8, %c0_10] : memref<32x128xf32, #tpu.memory_space<vmem>>, vector<8x128xf32>
    %46 = vector.shape_cast %45 : vector<8x128xf32> to vector<1x8x128xf32>
    %c8_11 = arith.constant 8 : index
    %c0_12 = arith.constant 0 : index
    %47 = vector.load %arg6[%c8_11, %c0_12] : memref<32x128xf32, #tpu.memory_space<vmem>>, vector<8x128xf32>
    %48 = vector.shape_cast %47 : vector<8x128xf32> to vector<1x8x128xf32>
    %49 = vector.broadcast %42 : vector<8x8x1xf32> to vector<8x8x128xf32>
    %50 = vector.broadcast %46 : vector<1x8x128xf32> to vector<8x8x128xf32>
    %51 = arith.mulf %49, %50 : vector<8x8x128xf32>
    %52 = vector.broadcast %42 : vector<8x8x1xf32> to vector<8x8x128xf32>
    %53 = vector.broadcast %48 : vector<1x8x128xf32> to vector<8x8x128xf32>
    %54 = arith.mulf %52, %53 : vector<8x8x128xf32>
    %55 = arith.minimumf %51, %54 : vector<8x8x128xf32>
    %56 = arith.maximumf %51, %54 : vector<8x8x128xf32>
    %57 = vector.broadcast %44 : vector<8x8x1xf32> to vector<8x8x128xf32>
    %58 = vector.broadcast %46 : vector<1x8x128xf32> to vector<8x8x128xf32>
    %59 = arith.mulf %57, %58 : vector<8x8x128xf32>
    %60 = vector.broadcast %44 : vector<8x8x1xf32> to vector<8x8x128xf32>
    %61 = vector.broadcast %48 : vector<1x8x128xf32> to vector<8x8x128xf32>
    %62 = arith.mulf %60, %61 : vector<8x8x128xf32>
    %63 = arith.minimumf %59, %62 : vector<8x8x128xf32>
    %64 = arith.minimumf %55, %63 : vector<8x8x128xf32>
    %65 = arith.maximumf %59, %62 : vector<8x8x128xf32>
    %66 = arith.maximumf %56, %65 : vector<8x8x128xf32>
    %cst_13 = arith.constant dense<0.000000e+00> : vector<8x128xf32>
    %67 = vector.multi_reduction <add>, %64, %cst_13 [1] : vector<8x8x128xf32> to vector<8x128xf32>
    %68 = arith.addf %38, %67 : vector<8x128xf32>
    %cst_14 = arith.constant dense<0.000000e+00> : vector<8x128xf32>
    %69 = vector.multi_reduction <add>, %66, %cst_14 [1] : vector<8x8x128xf32> to vector<8x128xf32>
    %70 = arith.addf %40, %69 : vector<8x128xf32>
    %71 = vector.extract_strided_slice %6 {offsets = [0, 16], sizes = [8, 8], strides = [1, 1]} : vector<8x32xf32> to vector<8x8xf32>
    %72 = vector.shape_cast %71 : vector<8x8xf32> to vector<8x8x1xf32>
    %73 = vector.extract_strided_slice %8 {offsets = [0, 16], sizes = [8, 8], strides = [1, 1]} : vector<8x32xf32> to vector<8x8xf32>
    %74 = vector.shape_cast %73 : vector<8x8xf32> to vector<8x8x1xf32>
    %c16 = arith.constant 16 : index
    %c0_15 = arith.constant 0 : index
    %75 = vector.load %arg5[%c16, %c0_15] : memref<32x128xf32, #tpu.memory_space<vmem>>, vector<8x128xf32>
    %76 = vector.shape_cast %75 : vector<8x128xf32> to vector<1x8x128xf32>
    %c16_16 = arith.constant 16 : index
    %c0_17 = arith.constant 0 : index
    %77 = vector.load %arg6[%c16_16, %c0_17] : memref<32x128xf32, #tpu.memory_space<vmem>>, vector<8x128xf32>
    %78 = vector.shape_cast %77 : vector<8x128xf32> to vector<1x8x128xf32>
    %79 = vector.broadcast %72 : vector<8x8x1xf32> to vector<8x8x128xf32>
    %80 = vector.broadcast %76 : vector<1x8x128xf32> to vector<8x8x128xf32>
    %81 = arith.mulf %79, %80 : vector<8x8x128xf32>
    %82 = vector.broadcast %72 : vector<8x8x1xf32> to vector<8x8x128xf32>
    %83 = vector.broadcast %78 : vector<1x8x128xf32> to vector<8x8x128xf32>
    %84 = arith.mulf %82, %83 : vector<8x8x128xf32>
    %85 = arith.minimumf %81, %84 : vector<8x8x128xf32>
    %86 = arith.maximumf %81, %84 : vector<8x8x128xf32>
    %87 = vector.broadcast %74 : vector<8x8x1xf32> to vector<8x8x128xf32>
    %88 = vector.broadcast %76 : vector<1x8x128xf32> to vector<8x8x128xf32>
    %89 = arith.mulf %87, %88 : vector<8x8x128xf32>
    %90 = vector.broadcast %74 : vector<8x8x1xf32> to vector<8x8x128xf32>
    %91 = vector.broadcast %78 : vector<1x8x128xf32> to vector<8x8x128xf32>
    %92 = arith.mulf %90, %91 : vector<8x8x128xf32>
    %93 = arith.minimumf %89, %92 : vector<8x8x128xf32>
    %94 = arith.minimumf %85, %93 : vector<8x8x128xf32>
    %95 = arith.maximumf %89, %92 : vector<8x8x128xf32>
    %96 = arith.maximumf %86, %95 : vector<8x8x128xf32>
    %cst_18 = arith.constant dense<0.000000e+00> : vector<8x128xf32>
    %97 = vector.multi_reduction <add>, %94, %cst_18 [1] : vector<8x8x128xf32> to vector<8x128xf32>
    %98 = arith.addf %68, %97 : vector<8x128xf32>
    %cst_19 = arith.constant dense<0.000000e+00> : vector<8x128xf32>
    %99 = vector.multi_reduction <add>, %96, %cst_19 [1] : vector<8x8x128xf32> to vector<8x128xf32>
    %100 = arith.addf %70, %99 : vector<8x128xf32>
    %101 = vector.extract_strided_slice %6 {offsets = [0, 24], sizes = [8, 8], strides = [1, 1]} : vector<8x32xf32> to vector<8x8xf32>
    %102 = vector.shape_cast %101 : vector<8x8xf32> to vector<8x8x1xf32>
    %103 = vector.extract_strided_slice %8 {offsets = [0, 24], sizes = [8, 8], strides = [1, 1]} : vector<8x32xf32> to vector<8x8xf32>
    %104 = vector.shape_cast %103 : vector<8x8xf32> to vector<8x8x1xf32>
    %c24 = arith.constant 24 : index
    %c0_20 = arith.constant 0 : index
    %105 = vector.load %arg5[%c24, %c0_20] : memref<32x128xf32, #tpu.memory_space<vmem>>, vector<8x128xf32>
    %106 = vector.shape_cast %105 : vector<8x128xf32> to vector<1x8x128xf32>
    %c24_21 = arith.constant 24 : index
    %c0_22 = arith.constant 0 : index
    %107 = vector.load %arg6[%c24_21, %c0_22] : memref<32x128xf32, #tpu.memory_space<vmem>>, vector<8x128xf32>
    %108 = vector.shape_cast %107 : vector<8x128xf32> to vector<1x8x128xf32>
    %109 = vector.broadcast %102 : vector<8x8x1xf32> to vector<8x8x128xf32>
    %110 = vector.broadcast %106 : vector<1x8x128xf32> to vector<8x8x128xf32>
    %111 = arith.mulf %109, %110 : vector<8x8x128xf32>
    %112 = vector.broadcast %102 : vector<8x8x1xf32> to vector<8x8x128xf32>
    %113 = vector.broadcast %108 : vector<1x8x128xf32> to vector<8x8x128xf32>
    %114 = arith.mulf %112, %113 : vector<8x8x128xf32>
    %115 = arith.minimumf %111, %114 : vector<8x8x128xf32>
    %116 = arith.maximumf %111, %114 : vector<8x8x128xf32>
    %117 = vector.broadcast %104 : vector<8x8x1xf32> to vector<8x8x128xf32>
    %118 = vector.broadcast %106 : vector<1x8x128xf32> to vector<8x8x128xf32>
    %119 = arith.mulf %117, %118 : vector<8x8x128xf32>
    %120 = vector.broadcast %104 : vector<8x8x1xf32> to vector<8x8x128xf32>
    %121 = vector.broadcast %108 : vector<1x8x128xf32> to vector<8x8x128xf32>
    %122 = arith.mulf %120, %121 : vector<8x8x128xf32>
    %123 = arith.minimumf %119, %122 : vector<8x8x128xf32>
    %124 = arith.minimumf %115, %123 : vector<8x8x128xf32>
    %125 = arith.maximumf %119, %122 : vector<8x8x128xf32>
    %126 = arith.maximumf %116, %125 : vector<8x8x128xf32>
    %cst_23 = arith.constant dense<0.000000e+00> : vector<8x128xf32>
    %127 = vector.multi_reduction <add>, %124, %cst_23 [1] : vector<8x8x128xf32> to vector<8x128xf32>
    %128 = arith.addf %98, %127 : vector<8x128xf32>
    %cst_24 = arith.constant dense<0.000000e+00> : vector<8x128xf32>
    %129 = vector.multi_reduction <add>, %126, %cst_24 [1] : vector<8x8x128xf32> to vector<8x128xf32>
    %130 = arith.addf %100, %129 : vector<8x128xf32>
    %131 = arith.index_cast %4 : i32 to index
    %c0_25 = arith.constant 0 : index
    %132 = vector.load %arg11[%131, %c0_25] : memref<8x128xf32, #tpu.memory_space<vmem>>, vector<8x128xf32>
    %133 = arith.addf %132, %128 : vector<8x128xf32>
    %134 = arith.index_cast %4 : i32 to index
    %c0_26 = arith.constant 0 : index
    %135 = vector.load %arg11[%134, %c0_26] : memref<8x128xf32, #tpu.memory_space<vmem>>, vector<8x128xf32>
    tpu.vector_store %arg11[%134, %c0_26], %133 {strides = array<i32>} : memref<8x128xf32, #tpu.memory_space<vmem>>, vector<8x128xf32>,
    %136 = arith.index_cast %4 : i32 to index
    %c0_27 = arith.constant 0 : index
    %137 = vector.load %arg12[%136, %c0_27] : memref<8x128xf32, #tpu.memory_space<vmem>>, vector<8x128xf32>
    %138 = arith.addf %137, %130 : vector<8x128xf32>
    %139 = arith.index_cast %4 : i32 to index
    %c0_28 = arith.constant 0 : index
    %140 = vector.load %arg12[%139, %c0_28] : memref<8x128xf32, #tpu.memory_space<vmem>>, vector<8x128xf32>
    tpu.vector_store %arg12[%139, %c0_28], %138 {strides = array<i32>} : memref<8x128xf32, #tpu.memory_space<vmem>>, vector<8x128xf32>,
    %c1_i32 = arith.constant 1 : i32
    %c0_i32_29 = arith.constant 0 : i32
    %141 = arith.cmpi eq, %arg2, %c0_i32_29 : i32
    %142 = arith.extui %141 : i1 to i32
    %c0_i32_30 = arith.constant 0 : i32
    %143 = arith.cmpi ne, %142, %c0_i32_30 : i32
    scf.if %143 {
      %c0_31 = arith.constant 0 : index
      %c0_32 = arith.constant 0 : index
      %144 = vector.load %arg11[%c0_31, %c0_32] : memref<8x128xf32, #tpu.memory_space<vmem>>, vector<8x128xf32>
      %c0_33 = arith.constant 0 : index
      %c0_34 = arith.constant 0 : index
      %145 = vector.load %arg7[%c0_33, %c0_34] : memref<1x128xf32, #tpu.memory_space<vmem>>, vector<1x128xf32>
      %146 = vector.broadcast %145 : vector<1x128xf32> to vector<8x128xf32>
      %147 = arith.addf %144, %146 : vector<8x128xf32>
      %c0_35 = arith.constant 0 : index
      %c0_36 = arith.constant 0 : index
      %148 = vector.load %arg9[%c0_35, %c0_36] : memref<8x128xf32, #tpu.memory_space<vmem>>, vector<8x128xf32>
      tpu.vector_store %arg9[%c0_35, %c0_36], %147 {strides = array<i32>} : memref<8x128xf32, #tpu.memory_space<vmem>>, vector<8x128xf32>,
      %c0_37 = arith.constant 0 : index
      %c0_38 = arith.constant 0 : index
      %149 = vector.load %arg12[%c0_37, %c0_38] : memref<8x128xf32, #tpu.memory_space<vmem>>, vector<8x128xf32>
      %c0_39 = arith.constant 0 : index
      %c0_40 = arith.constant 0 : index
      %150 = vector.load %arg8[%c0_39, %c0_40] : memref<1x128xf32, #tpu.memory_space<vmem>>, vector<1x128xf32>
      %151 = vector.broadcast %150 : vector<1x128xf32> to vector<8x128xf32>
      %152 = arith.addf %149, %151 : vector<8x128xf32>
      %c0_41 = arith.constant 0 : index
      %c0_42 = arith.constant 0 : index
      %153 = vector.load %arg10[%c0_41, %c0_42] : memref<8x128xf32, #tpu.memory_space<vmem>>, vector<8x128xf32>
      tpu.vector_store %arg10[%c0_41, %c0_42], %152 {strides = array<i32>} : memref<8x128xf32, #tpu.memory_space<vmem>>, vector<8x128xf32>,
    } else {
    }
    return
  }
  func.func @transform_0(%arg0: i32, %arg1: i32, %arg2: i32) -> (i32, i32) {
    %c0_i32 = arith.constant 0 : i32
    return %arg0, %arg2 : i32, i32
  }
  func.func @transform_1(%arg0: i32, %arg1: i32, %arg2: i32) -> (i32, i32) {
    %c0_i32 = arith.constant 0 : i32
    return %arg0, %arg2 : i32, i32
  }
  func.func @transform_2(%arg0: i32, %arg1: i32, %arg2: i32) -> (i32, i32) {
    %c0_i32 = arith.constant 0 : i32
    return %arg2, %arg1 : i32, i32
  }
  func.func @transform_3(%arg0: i32, %arg1: i32, %arg2: i32) -> (i32, i32) {
    %c0_i32 = arith.constant 0 : i32
    return %arg2, %arg1 : i32, i32
  }
  func.func @transform_4(%arg0: i32, %arg1: i32, %arg2: i32) -> (i32, i32) {
    %c0_i32 = arith.constant 0 : i32
    %c0_i32_0 = arith.constant 0 : i32
    return %c0_i32, %arg1 : i32, i32
  }
  func.func @transform_5(%arg0: i32, %arg1: i32, %arg2: i32) -> (i32, i32) {
    %c0_i32 = arith.constant 0 : i32
    %c0_i32_0 = arith.constant 0 : i32
    return %c0_i32, %arg1 : i32, i32
  }
  func.func @transform_6(%arg0: i32, %arg1: i32, %arg2: i32) -> (i32, i32) {
    %c0_i32 = arith.constant 0 : i32
    return %arg0, %arg1 : i32, i32
  }
  func.func @transform_7(%arg0: i32, %arg1: i32, %arg2: i32) -> (i32, i32) {
    %c0_i32 = arith.constant 0 : i32
    return %arg0, %arg1 : i32, i32
  }
}

</mosaic_0001>

<bundles_post_ra>
// kernel: fuzzy_mlp_forward.1
= control target key start
LH: loop header
LB: loop body
LE: loop exit
PB: predicated region body
PF: predicated region fallthrough
CT: control target
= control target key end

     0   :  { %13 = vsyncpa [#allocation5], 0  ;;  %v35_v0 = vlaneseq  ;;  %s1819_s0 = inlined_call_operand.vmem [shape: f32[8,32], index: 0, kind: input, shape index: {}]   ;;  %s1820_s1 = inlined_call_operand.vmem [shape: f32[8,32], index: 1, kind: input, shape index: {}]   ;;  %s1821_s2 = inlined_call_operand.vmem [shape: f32[32,128], index: 2, kind: input, shape index: {}]   ;;  %s1822_s3 = inlined_call_operand.vmem [shape: f32[32,128], index: 3, kind: input, shape index: {}]   ;;  %s1823_s4 = inlined_call_operand.vmem [shape: f32[1,128], index: 4, kind: input, shape index: {}]   ;;  %s1824_s5 = inlined_call_operand.vmem [shape: f32[1,128], index: 5, kind: input, shape index: {}]   ;;  %s1825_s6 = inlined_call_operand.hbm [shape: f32[8,128], index: 6, kind: output, shape index: {0}]   ;;  %s1826_s7 = inlined_call_operand.hbm [shape: f32[8,128], index: 7, kind: output, shape index: {1}]  }
   0x1   :  { %14 = vsyncpa [#allocation7], 0  ;;  %v33_v2 = vld [vmem:[%s1819_s0] sm:$0xff]  ;;  %vm1124_vm0 = vcmask 1041409   ;;  %vm1126_vm1 = vcmask 1042434   ;;  %vm1128_vm2 = vcmask 1043459  }
   0x2   :  { %v36_v1 = vshrl.u32 %v35_v0, 7  ;;  %v34_v19 = vld [vmem:[%s1820_s1] sm:$0xff]  ;;  %vm1130_vm3 = vcmask 1044484   ;;  %vm1132_vm4 = vcmask 1045509   ;;  %vm1134_vm5 = vcmask 1046534   ;;  %s1263_s19 = smov [#allocation4]  }
   0x3   :  { %v1348_v32 = vld [vmem:[%s1821_s2] sm:$0xff]  ;;  %vm1136_vm6 = vcmask 1047559   ;;  %s1189_s20 = sshll.u32 %s1263_s19, 4  ;;  %s1264_s23 = smov [#allocation6]   ;;  %s1190_s20 = int_to_ptr.vmem [resolvable:$true] %s1189_s20 }
   0x4   :  { %v51_v3 = vsub.s32 2, %v36_v1  ;;  %v37_v4 = vsub.s32 0, %v36_v1  ;;  %v58_v5 = vsub.s32 3, %v36_v1  ;;  %v44_v6 = vsub.s32 1, %v36_v1  ;;  %v1353_v33 = vld [vmem:[%s1822_s3] sm:$0xff]  ;;  %s1199_s24 = sshll.u32 %s1264_s23, 4  ;;  %p1220_p1 = scmp.lt.s32.totalorder %s1190_s20, %s1190_s20  ;;  %s1200_s24 = int_to_ptr.vmem [resolvable:$true] %s1199_s24 }
   0x5   :  { %v72_v11 = vsub.s32 5, %v36_v1  ;;  %v65_v12 = vsub.s32 4, %v36_v1  ;;  %v86_v15 = vsub.s32 7, %v36_v1  ;;  %v79_v16 = vsub.s32 6, %v36_v1 }
   0x6   :  { %v1308_v7 = vrot.slane %v33_v2, %v51_v3  ;;  %v38_v8 = vrot.slane %v33_v2, %v37_v4  ;;  %v1311_v9 = vrot.slane %v33_v2, %v58_v5  ;;  %v45_v10 = vrot.slane %v33_v2, %v44_v6 }
   0x7   :  { %v1314_v13 = vrot.slane %v33_v2, %v72_v11  ;;  %v1316_v14 = vrot.slane %v33_v2, %v65_v12  ;;  %v1320_v17 = vrot.slane %v33_v2, %v86_v15  ;;  %v1322_v18 = vrot.slane %v33_v2, %v79_v16 }
   0x8   :  { %54 = vbcast.lane.b32.xlu1 %v1308_v7, 256  ;;  %40 = vbcast.lane.b32.xlu0 %v38_v8, 256  ;;  %v101_v20 = vrot.slane %v34_v19, %v44_v6  ;;  %v94_v21 = vrot.slane %v34_v19, %v37_v4  ;;  %v115_v22 = vrot.slane %v34_v19, %v58_v5 }
   0x9   :  { %v108_v23 = vrot.slane %v34_v19, %v51_v3  ;;  %v129_v24 = vrot.slane %v34_v19, %v72_v11  ;;  %v122_v25 = vrot.slane %v34_v19, %v65_v12  ;;  %v143_v26 = vrot.slane %v34_v19, %v86_v15 }
   0xa   :  { %v136_v27 = vrot.slane %v34_v19, %v79_v16 }
   0xc   :  { %61 = vbcast.lane.b32.xlu1 %v1311_v9, 256  ;;  %47 = vbcast.lane.b32.xlu0 %v45_v10, 256 }
  0x10   :  { %75 = vbcast.lane.b32.xlu1 %v1314_v13, 256  ;;  %68 = vbcast.lane.b32.xlu0 %v1316_v14, 256 }
  0x14   :  { %89 = vbcast.lane.b32.xlu1 %v1320_v17, 256  ;;  %82 = vbcast.lane.b32.xlu0 %v1322_v18, 256 }
  0x18   :  { %103 = vbcast.lane.b32.xlu1 %v101_v20, 256  ;;  %96 = vbcast.lane.b32.xlu0 %v94_v21, 256 }
  0x1c   :  { %117 = vbcast.lane.b32.xlu1 %v115_v22, 256  ;;  %110 = vbcast.lane.b32.xlu0 %v108_v23, 256 }
  0x20   :  { %131 = vbcast.lane.b32.xlu1 %v129_v24, 256  ;;  %124 = vbcast.lane.b32.xlu0 %v122_v25, 256 }
  0x24   :  { %145 = vbcast.lane.b32.xlu1 %v143_v26, 256  ;;  %138 = vbcast.lane.b32.xlu0 %v136_v27, 256 }
  0x28   :  { %347 = vbcast.lane.b32.xlu1 %v45_v10, 264  ;;  %343 = vbcast.lane.b32.xlu0 %v38_v8, 264 }
  0x2c   :  { %379 = vbcast.lane.b32.xlu1 %v101_v20, 264  ;;  %375 = vbcast.lane.b32.xlu0 %v94_v21, 264 }
  0x30   :  { %383 = vbcast.lane.b32.xlu1 %v108_v23, 264  ;;  %351 = vbcast.lane.b32.xlu0 %v1308_v7, 264 }
  0x34   :  { %387 = vbcast.lane.b32.xlu1 %v115_v22, 264  ;;  %355 = vbcast.lane.b32.xlu0 %v1311_v9, 264 }
  0x38   :  { %605 = vbcast.lane.b32.xlu1 %v45_v10, 272  ;;  %601 = vbcast.lane.b32.xlu0 %v38_v8, 272 }
  0x3c   :  { %637 = vbcast.lane.b32.xlu1 %v101_v20, 272  ;;  %633 = vbcast.lane.b32.xlu0 %v94_v21, 272 }
  0x40   :  { %391 = vbcast.lane.b32.xlu1 %v122_v25, 264  ;;  %359 = vbcast.lane.b32.xlu0 %v1316_v14, 264 }
  0x44   :  { %641 = vbcast.lane.b32.xlu1 %v108_v23, 272  ;;  %609 = vbcast.lane.b32.xlu0 %v1308_v7, 272 }
  0x48   :  { %395 = vbcast.lane.b32.xlu1 %v129_v24, 264  ;;  %363 = vbcast.lane.b32.xlu0 %v1314_v13, 264 }
  0x4c   :  { %645 = vbcast.lane.b32.xlu1 %v115_v22, 272  ;;  %613 = vbcast.lane.b32.xlu0 %v1311_v9, 272 }
  0x50   :  { %863 = vbcast.lane.b32.xlu1 %v45_v10, 280  ;;  %859 = vbcast.lane.b32.xlu0 %v38_v8, 280 }
  0x54   :  { %895 = vbcast.lane.b32.xlu1 %v101_v20, 280  ;;  %891 = vbcast.lane.b32.xlu0 %v94_v21, 280 }
  0x58   :  { %399 = vbcast.lane.b32.xlu1 %v136_v27, 264  ;;  %367 = vbcast.lane.b32.xlu0 %v1322_v18, 264 }
  0x5c   :  { %649 = vbcast.lane.b32.xlu1 %v122_v25, 272  ;;  %617 = vbcast.lane.b32.xlu0 %v1316_v14, 272 }
  0x60   :  { %899 = vbcast.lane.b32.xlu1 %v108_v23, 280  ;;  %867 = vbcast.lane.b32.xlu0 %v1308_v7, 280 }
  0x64   :  { %403 = vbcast.lane.b32.xlu1 %v143_v26, 264  ;;  %371 = vbcast.lane.b32.xlu0 %v1320_v17, 264 }
  0x68   :  { %653 = vbcast.lane.b32.xlu1 %v129_v24, 272  ;;  %621 = vbcast.lane.b32.xlu0 %v1314_v13, 272 }
  0x6c   :  { %903 = vbcast.lane.b32.xlu1 %v115_v22, 280  ;;  %871 = vbcast.lane.b32.xlu0 %v1311_v9, 280 }
  0x70   :  { %657 = vbcast.lane.b32.xlu1 %v136_v27, 272  ;;  %625 = vbcast.lane.b32.xlu0 %v1322_v18, 272 }
  0x74   :  { %907 = vbcast.lane.b32.xlu1 %v122_v25, 280  ;;  %875 = vbcast.lane.b32.xlu0 %v1316_v14, 280 }
  0x78   :  { %661 = vbcast.lane.b32.xlu1 %v143_v26, 272  ;;  %629 = vbcast.lane.b32.xlu0 %v1320_v17, 272 }
  0x7a   :  { %v55_v28 = vpop.permute.xlu1 %54  ;;  %v41_v29 = vpop.permute.xlu0 %40 }
  0x7b   :  { %v1357_v36 = vmul.f32 %v1348_v32, %v55_v28  ;;  %v1360_v37 = vmul.f32 %v1353_v33, %v55_v28  ;;  %v149_v38 = vmul.f32 %v1348_v32, %v41_v29  ;;  %v157_v39 = vmul.f32 %v1353_v33, %v41_v29 }
  0x7c   :  { %911 = vbcast.lane.b32.xlu1 %v129_v24, 280  ;;  %879 = vbcast.lane.b32.xlu0 %v1314_v13, 280 }
  0x7d   :  { %v167_v46 = vmin.f32 %v1357_v36, %v1360_v37  ;;  %v175_v51 = vmax.f32 %v1357_v36, %v1360_v37  ;;  %v165_v52 = vmin.f32 %v149_v38, %v157_v39  ;;  %v173_v53 = vmax.f32 %v149_v38, %v157_v39 }
  0x7e   :  { %v62_v30 = vpop.permute.xlu1 %61  ;;  %v48_v31 = vpop.permute.xlu0 %47 }
  0x7f   :  { %v152_v40 = vmul.f32 %v1348_v32, %v62_v30  ;;  %v160_v41 = vmul.f32 %v1353_v33, %v62_v30  ;;  %v150_v42 = vmul.f32 %v1348_v32, %v48_v31  ;;  %v158_v43 = vmul.f32 %v1353_v33, %v48_v31 }
  0x80   :  { %915 = vbcast.lane.b32.xlu1 %v136_v27, 280  ;;  %883 = vbcast.lane.b32.xlu0 %v1322_v18, 280 }
  0x81   :  { %v168_v54 = vmin.f32 %v152_v40, %v160_v41  ;;  %v176_v55 = vmax.f32 %v152_v40, %v160_v41  ;;  %v166_v56 = vmin.f32 %v150_v42, %v158_v43  ;;  %v174_v1 = vmax.f32 %v150_v42, %v158_v43 }
  0x82   :  { %v76_v34 = vpop.permute.xlu1 %75  ;;  %v69_v35 = vpop.permute.xlu0 %68 }
  0x83   :  { %v1372_v47 = vmul.f32 %v1348_v32, %v76_v34  ;;  %v1375_v48 = vmul.f32 %v1353_v33, %v76_v34  ;;  %v1378_v49 = vmul.f32 %v1348_v32, %v69_v35  ;;  %v1381_v50 = vmul.f32 %v1353_v33, %v69_v35 }
  0x84   :  { %919 = vbcast.lane.b32.xlu1 %v143_v26, 280  ;;  %887 = vbcast.lane.b32.xlu0 %v1320_v17, 280 }
  0x85   :  { %v170_v2 = vmin.f32 %v1372_v47, %v1375_v48  ;;  %v178_v3 = vmax.f32 %v1372_v47, %v1375_v48  ;;  %v169_v4 = vmin.f32 %v1378_v49, %v1381_v50  ;;  %v177_v9 = vmax.f32 %v1378_v49, %v1381_v50 }
  0x86   :  { %v90_v44 = vpop.permute.xlu1 %89  ;;  %v83_v45 = vpop.permute.xlu0 %82 }
  0x87   :  { %v1386_v57 = vmul.f32 %v1348_v32, %v90_v44  ;;  %v1389_v58 = vmul.f32 %v1353_v33, %v90_v44  ;;  %v1406_v11 = vmul.f32 %v1348_v32, %v83_v45  ;;  %v1409_v12 = vmul.f32 %v1353_v33, %v83_v45 }
  0x89   :  { %v172_v10 = vmin.f32 %v1386_v57, %v1389_v58 }
  0x8a   :  { %v104_v59 = vpop.permute.xlu1 %103  ;;  %v97_v60 = vpop.permute.xlu0 %96 }
  0x8b   :  { %v182_v61 = vmul.f32 %v1348_v32, %v104_v59  ;;  %v190_v62 = vmul.f32 %v1353_v33, %v104_v59  ;;  %v181_v63 = vmul.f32 %v1348_v32, %v97_v60  ;;  %v189_v0 = vmul.f32 %v1353_v33, %v97_v60 }
  0x8d   :  { %v198_v5 = vmin.f32 %v182_v61, %v190_v62  ;;  %v214_v6 = vmax.f32 %v182_v61, %v190_v62  ;;  %v197_v7 = vmin.f32 %v181_v63, %v189_v0  ;;  %v213_v8 = vmax.f32 %v181_v63, %v189_v0 }
  0x8e   :  { %v118_v13 = vpop.permute.xlu1 %117  ;;  %v111_v14 = vpop.permute.xlu0 %110 }
  0x8f   :  { %v206_v15 = vmin.f32 %v166_v56, %v198_v5  ;;  %v222_v16 = vmax.f32 %v174_v1, %v214_v6  ;;  %v205_v17 = vmin.f32 %v165_v52, %v197_v7  ;;  %v221_v18 = vmax.f32 %v173_v53, %v213_v8 }
  0x90   :  { %v184_v19 = vmul.f32 %v1348_v32, %v118_v13  ;;  %v192_v20 = vmul.f32 %v1353_v33, %v118_v13  ;;  %v183_v21 = vmul.f32 %v1348_v32, %v111_v14  ;;  %v191_v22 = vmul.f32 %v1353_v33, %v111_v14 }
  0x91   :  { %v235_v23 = vrot.slane %v206_v15, 4  ;;  %v291_v24 = vrot.slane %v222_v16, 4  ;;  %v229_v25 = vrot.slane %v205_v17, 4  ;;  %v285_v26 = vrot.slane %v221_v18, 4 }
  0x92   :  { %v200_v27 = vmin.f32 %v184_v19, %v192_v20  ;;  %v216_v28 = vmax.f32 %v184_v19, %v192_v20  ;;  %v199_v29 = vmin.f32 %v183_v21, %v191_v22  ;;  %v215_v30 = vmax.f32 %v183_v21, %v191_v22  ;;  %v132_v45 = vpop.permute.xlu1 %131  ;;  %v125_v7 = vpop.permute.xlu0 %124 }
  0x93   :  { %v236_v31 = vadd.f32 %v235_v23, %v206_v15  ;;  %v292_v34 = vadd.f32 %v291_v24, %v222_v16  ;;  %v230_v35 = vadd.f32 %v229_v25, %v205_v17  ;;  %v286_v36 = vadd.f32 %v285_v26, %v221_v18 }
  0x94   :  { %v208_v37 = vmin.f32 %v168_v54, %v200_v27  ;;  %v224_v38 = vmax.f32 %v176_v55, %v216_v28  ;;  %v207_v39 = vmin.f32 %v167_v46, %v199_v29  ;;  %v223_v40 = vmax.f32 %v175_v51, %v215_v30 }
  0x95   :  { %v237_v41 = vrot.slane %v236_v31, 2  ;;  %v293_v42 = vrot.slane %v292_v34, 2  ;;  %v231_v43 = vrot.slane %v230_v35, 2  ;;  %v287_v44 = vrot.slane %v286_v36, 2 }
  0x96   :  { %v247_v52 = vrot.slane %v208_v37, 4  ;;  %v303_v53 = vrot.slane %v224_v38, 4  ;;  %v241_v56 = vrot.slane %v207_v39, 4  ;;  %v297_v59 = vrot.slane %v223_v40, 4  ;;  %v146_v20 = vpop.permute.xlu1 %145 }
  0x97   :  { %v238_v60 = vadd.f32 %v237_v41, %v236_v31  ;;  %v294_v61 = vadd.f32 %v293_v42, %v292_v34  ;;  %v232_v62 = vadd.f32 %v231_v43, %v230_v35  ;;  %v288_v63 = vadd.f32 %v287_v44, %v286_v36 }
  0x98   :  { %v248_v0 = vadd.f32 %v247_v52, %v208_v37  ;;  %v304_v1 = vadd.f32 %v303_v53, %v224_v38  ;;  %v242_v5 = vadd.f32 %v241_v56, %v207_v39  ;;  %v298_v54 = vadd.f32 %v297_v59, %v223_v40  ;;  %v139_v37 = vpop.permute.xlu0 %138 }
  0x99   :  { %v239_v55 = vrot.slane %v238_v60, 1  ;;  %v295_v46 = vrot.slane %v294_v61, 1  ;;  %v233_v51 = vrot.slane %v232_v62, 1  ;;  %v289_v6 = vrot.slane %v288_v63, 1 }
  0x9a   :  { %v249_v8 = vrot.slane %v248_v0, 2  ;;  %v305_v13 = vrot.slane %v304_v1, 2  ;;  %v243_v14 = vrot.slane %v242_v5, 2  ;;  %v299_v15 = vrot.slane %v298_v54, 2  ;;  %v348_v52 = vpop.permute.xlu1 %347 }
  0x9b   :  { %v180_v16 = vmax.f32 %v1386_v57, %v1389_v58  ;;  %v171_v17 = vmin.f32 %v1406_v11, %v1409_v12  ;;  %v179_v18 = vmax.f32 %v1406_v11, %v1409_v12  ;;  %v1421_v19 = vadd.f32 %v239_v55, %v238_v60 }
  0x9c   :  { %v250_v21 = vadd.f32 %v249_v8, %v248_v0  ;;  %v1423_v22 = vadd.f32 %v305_v13, %v304_v1  ;;  %v1425_v23 = vadd.f32 %v243_v14, %v242_v5  ;;  %v1427_v24 = vadd.f32 %v299_v15, %v298_v54  ;;  %v344_v1 = vpop.permute.xlu0 %343 }
  0x9d   :  { %v186_v25 = vmul.f32 %v1348_v32, %v132_v45  ;;  %v194_v26 = vmul.f32 %v1353_v33, %v132_v45  ;;  %v185_v27 = vmul.f32 %v1348_v32, %v125_v7  ;;  %v193_v28 = vmul.f32 %v1353_v33, %v125_v7 }
  0x9e   :  { %v1433_v29 = vadd.f32 %v295_v46, %v294_v61  ;;  %v1435_v11 = vadd.f32 %v233_v51, %v232_v62  ;;  %v1437_v12 = vadd.f32 %v289_v6, %v288_v63  ;;  %v251_v30 = vrot.slane %v250_v21, 1  ;;  %v380_v7 = vpop.permute.xlu1 %379 }
  0x9f   :  { %v202_v31 = vmin.f32 %v186_v25, %v194_v26  ;;  %v218_v34 = vmax.f32 %v186_v25, %v194_v26  ;;  %v201_v35 = vmin.f32 %v185_v27, %v193_v28  ;;  %v217_v36 = vmax.f32 %v185_v27, %v193_v28 }
  0xa0   :  { %v1439_v38 = vadd.f32 %v251_v30, %v250_v21  ;;  %v307_v39 = vrot.slane %v1423_v22, 1  ;;  %v245_v40 = vrot.slane %v1425_v23, 1  ;;  %v301_v41 = vrot.slane %v1427_v24, 1  ;;  %v376_v30 = vpop.permute.xlu0 %375 }
  0xa1   :  { %v210_v42 = vmin.f32 %v170_v2, %v202_v31  ;;  %v226_v43 = vmax.f32 %v178_v3, %v218_v34  ;;  %v209_v44 = vmin.f32 %v169_v4, %v201_v35  ;;  %v225_v45 = vmax.f32 %v177_v9, %v217_v36 }
  0xa2   :  { %v188_v53 = vmul.f32 %v1348_v32, %v146_v20  ;;  %v196_v56 = vmul.f32 %v1353_v33, %v146_v20  ;;  %v187_v59 = vmul.f32 %v1348_v32, %v139_v37  ;;  %v195_v2 = vmul.f32 %v1353_v33, %v139_v37  ;;  %v1466_v37 = vld [vmem:[%s1821_s2 + $0x8] sm:$0xff] }
  0xa3   :  { %v259_v60 = vrot.slane %v210_v42, 4  ;;  %v315_v47 = vrot.slane %v226_v43, 4  ;;  %v253_v48 = vrot.slane %v209_v44, 4  ;;  %v309_v3 = vrot.slane %v225_v45, 4 }
  0xa4   :  { %v204_v61 = vmin.f32 %v188_v53, %v196_v56  ;;  %v220_v62 = vmax.f32 %v188_v53, %v196_v56  ;;  %v203_v4 = vmin.f32 %v187_v59, %v195_v2  ;;  %v219_v63 = vmax.f32 %v187_v59, %v195_v2  ;;  %v384_v56 = vpop.permute.xlu1 %383 }
  0xa5   :  { %v260_v0 = vadd.f32 %v259_v60, %v210_v42  ;;  %v316_v49 = vadd.f32 %v315_v47, %v226_v43  ;;  %v254_v50 = vadd.f32 %v253_v48, %v209_v44  ;;  %v310_v9 = vadd.f32 %v309_v3, %v225_v45  ;;  %v1471_v42 = vld [vmem:[%s1822_s3 + $0x8] sm:$0xff] }
  0xa6   :  { %v212_v5 = vmin.f32 %v172_v10, %v204_v61  ;;  %v228_v32 = vmax.f32 %v180_v16, %v220_v62  ;;  %v211_v54 = vmin.f32 %v171_v17, %v203_v4  ;;  %v227_v33 = vmax.f32 %v179_v18, %v219_v63 }
  0xa7   :  { %v261_v55 = vrot.slane %v260_v0, 2  ;;  %v317_v46 = vrot.slane %v316_v49, 2  ;;  %v255_v51 = vrot.slane %v254_v50, 2  ;;  %v311_v6 = vrot.slane %v310_v9, 2 }
  0xa8   :  { %v271_v8 = vrot.slane %v212_v5, 4  ;;  %v327_v13 = vrot.slane %v228_v32, 4  ;;  %v265_v14 = vrot.slane %v211_v54, 4  ;;  %v321_v15 = vrot.slane %v227_v33, 4 }
  0xa9   :  { %v262_v20 = vadd.f32 %v261_v55, %v260_v0  ;;  %v318_v21 = vadd.f32 %v317_v46, %v316_v49  ;;  %v256_v25 = vadd.f32 %v255_v51, %v254_v50  ;;  %v312_v26 = vadd.f32 %v311_v6, %v310_v9  ;;  %v352_v0 = vpop.permute.xlu0 %351 }
  0xaa   :  { %v272_v27 = vadd.f32 %v271_v8, %v212_v5  ;;  %v328_v28 = vadd.f32 %v327_v13, %v228_v32  ;;  %v266_v57 = vadd.f32 %v265_v14, %v211_v54  ;;  %v322_v58 = vadd.f32 %v321_v15, %v227_v33  ;;  %v388_v33 = vpop.permute.xlu1 %387 }
  0xab   :  { %v263_v10 = vrot.slane %v262_v20, 1  ;;  %v319_v16 = vrot.slane %v318_v21, 1  ;;  %v257_v17 = vrot.slane %v256_v25, 1  ;;  %v313_v18 = vrot.slane %v312_v26, 1 }
  0xac   :  { %v273_v31 = vrot.slane %v272_v27, 2  ;;  %v329_v34 = vrot.slane %v328_v28, 2  ;;  %v267_v35 = vrot.slane %v266_v57, 2  ;;  %v323_v36 = vrot.slane %v322_v58, 2 }
  0xad   :  { %v1474_v43 = vadd.f32 %v307_v39, %v1423_v22  ;;  %v1477_v44 = vadd.f32 %v245_v40, %v1425_v23  ;;  %v1480_v45 = vadd.f32 %v301_v41, %v1427_v24  ;;  %v1482_v53 = vadd.f32 %v263_v10, %v262_v20 }
  0xae   :  { %v274_v59 = vadd.f32 %v273_v31, %v272_v27  ;;  %v1484_v2 = vadd.f32 %v329_v34, %v328_v28  ;;  %v1486_v60 = vadd.f32 %v267_v35, %v266_v57  ;;  %v1488_v47 = vadd.f32 %v323_v36, %v322_v58  ;;  %v356_v58 = vpop.permute.xlu0 %355  ;;  %v606_v36 = vpop.permute.xlu1 %605 }
  0xaf   :  { %v408_v48 = vmul.f32 %v1466_v37, %v348_v52  ;;  %v416_v22 = vmul.f32 %v1471_v42, %v348_v52  ;;  %v407_v23 = vmul.f32 %v1466_v37, %v344_v1  ;;  %v415_v39 = vmul.f32 %v1471_v42, %v344_v1 }
  0xb0   :  { %v1494_v24 = vadd.f32 %v319_v16, %v318_v21  ;;  %v1496_v40 = vadd.f32 %v257_v17, %v256_v25  ;;  %v1498_v41 = vadd.f32 %v313_v18, %v312_v26  ;;  %v275_v3 = vrot.slane %v274_v59, 1 }
  0xb1   :  { %v331_v61 = vrot.slane %v1484_v2, 1  ;;  %v269_v62 = vrot.slane %v1486_v60, 1  ;;  %v325_v4 = vrot.slane %v1488_v47, 1  ;;  %v424_v63 = vmin.f32 %v408_v48, %v416_v22 }
  0xb2   :  { %v1503_v52 = vadd.f32 %v275_v3, %v274_v59  ;;  %v432_v49 = vmax.f32 %v408_v48, %v416_v22  ;;  %v423_v50 = vmin.f32 %v407_v23, %v415_v39  ;;  %v431_v9 = vmax.f32 %v407_v23, %v415_v39 }
  0xb3   :  { %v440_v1 = vmul.f32 %v1466_v37, %v380_v7  ;;  %v448_v5 = vmul.f32 %v1471_v42, %v380_v7  ;;  %v439_v32 = vmul.f32 %v1466_v37, %v376_v30  ;;  %v447_v54 = vmul.f32 %v1471_v42, %v376_v30 }
  0xb4   :  { %v441_v55 = vmul.f32 %v1466_v37, %v384_v56  ;;  %v449_v46 = vmul.f32 %v1471_v42, %v384_v56  ;;  %v409_v51 = vmul.f32 %v1466_v37, %v352_v0  ;;  %v417_v6 = vmul.f32 %v1471_v42, %v352_v0 }
  0xb5   :  { %v456_v8 = vmin.f32 %v440_v1, %v448_v5  ;;  %v472_v13 = vmax.f32 %v440_v1, %v448_v5  ;;  %v455_v14 = vmin.f32 %v439_v32, %v447_v54  ;;  %v471_v15 = vmax.f32 %v439_v32, %v447_v54 }
  0xb6   :  { %v457_v20 = vmin.f32 %v441_v55, %v449_v46  ;;  %v473_v21 = vmax.f32 %v441_v55, %v449_v46  ;;  %v425_v7 = vmin.f32 %v409_v51, %v417_v6  ;;  %v433_v25 = vmax.f32 %v409_v51, %v417_v6 }
  0xb7   :  { %v464_v26 = vmin.f32 %v424_v63, %v456_v8  ;;  %v480_v27 = vmax.f32 %v432_v49, %v472_v13  ;;  %v463_v28 = vmin.f32 %v423_v50, %v455_v14  ;;  %v479_v57 = vmax.f32 %v431_v9, %v471_v15 }
  0xb8   :  { %v465_v10 = vmin.f32 %v425_v7, %v457_v20  ;;  %v481_v16 = vmax.f32 %v433_v25, %v473_v21  ;;  %v442_v17 = vmul.f32 %v1466_v37, %v388_v33  ;;  %v450_v18 = vmul.f32 %v1471_v42, %v388_v33  ;;  %v602_v33 = vpop.permute.xlu0 %601  ;;  %v638_v20 = vpop.permute.xlu1 %637 }
  0xb9   :  { %v493_v30 = vrot.slane %v464_v26, 4  ;;  %v549_v31 = vrot.slane %v480_v27, 4  ;;  %v487_v34 = vrot.slane %v463_v28, 4  ;;  %v543_v35 = vrot.slane %v479_v57, 4 }
  0xba   :  { %v499_v56 = vrot.slane %v465_v10, 4  ;;  %v555_v59 = vrot.slane %v481_v16, 4  ;;  %v458_v48 = vmin.f32 %v442_v17, %v450_v18  ;;  %v474_v22 = vmax.f32 %v442_v17, %v450_v18 }
  0xbb   :  { %v494_v23 = vadd.f32 %v493_v30, %v464_v26  ;;  %v550_v39 = vadd.f32 %v549_v31, %v480_v27  ;;  %v488_v3 = vadd.f32 %v487_v34, %v463_v28  ;;  %v544_v63 = vadd.f32 %v543_v35, %v479_v57 }
  0xbc   :  { %v500_v0 = vadd.f32 %v499_v56, %v465_v10  ;;  %v556_v49 = vadd.f32 %v555_v59, %v481_v16  ;;  %v410_v50 = vmul.f32 %v1466_v37, %v356_v58  ;;  %v418_v9 = vmul.f32 %v1471_v42, %v356_v58  ;;  %v634_v56 = vpop.permute.xlu0 %633 }
  0xbd   :  { %v495_v1 = vrot.slane %v494_v23, 2  ;;  %v551_v5 = vrot.slane %v550_v39, 2  ;;  %v489_v32 = vrot.slane %v488_v3, 2  ;;  %v545_v54 = vrot.slane %v544_v63, 2 }
  0xbe   :  { %v501_v55 = vrot.slane %v500_v0, 2  ;;  %v557_v46 = vrot.slane %v556_v49, 2  ;;  %v426_v51 = vmin.f32 %v410_v50, %v418_v9  ;;  %v434_v6 = vmax.f32 %v410_v50, %v418_v9  ;;  %v392_v9 = vpop.permute.xlu1 %391 }
  0xbf   :  { %v496_v8 = vadd.f32 %v495_v1, %v494_v23  ;;  %v552_v13 = vadd.f32 %v551_v5, %v550_v39  ;;  %v490_v14 = vadd.f32 %v489_v32, %v488_v3  ;;  %v546_v15 = vadd.f32 %v545_v54, %v544_v63 }
  0xc0   :  { %v502_v21 = vadd.f32 %v501_v55, %v500_v0  ;;  %v558_v7 = vadd.f32 %v557_v46, %v556_v49  ;;  %v466_v25 = vmin.f32 %v426_v51, %v458_v48  ;;  %v482_v26 = vmax.f32 %v434_v6, %v474_v22  ;;  %v1520_v48 = vld [vmem:[%s1821_s2 + $0x10] sm:$0xff] }
  0xc1   :  { %v497_v27 = vrot.slane %v496_v8, 1  ;;  %v553_v28 = vrot.slane %v552_v13, 1  ;;  %v491_v57 = vrot.slane %v490_v14, 1  ;;  %v547_v58 = vrot.slane %v546_v15, 1  ;;  %v1525_v22 = vld [vmem:[%s1822_s3 + $0x10] sm:$0xff] }
  0xc2   :  { %v503_v10 = vrot.slane %v502_v21, 1  ;;  %v559_v16 = vrot.slane %v558_v7, 1  ;;  %v505_v17 = vrot.slane %v466_v25, 4  ;;  %v561_v18 = vrot.slane %v482_v26, 4 }
  0xc3   :  { %v498_v30 = vadd.f32 %v497_v27, %v496_v8  ;;  %v554_v31 = vadd.f32 %v553_v28, %v552_v13  ;;  %v492_v34 = vadd.f32 %v491_v57, %v490_v14  ;;  %v548_v35 = vadd.f32 %v547_v58, %v546_v15  ;;  %v360_v14 = vpop.permute.xlu0 %359  ;;  %v642_v28 = vpop.permute.xlu1 %641 }
  0xc4   :  { %v504_v59 = vadd.f32 %v503_v10, %v502_v21  ;;  %v560_v23 = vadd.f32 %v559_v16, %v558_v7  ;;  %v506_v39 = vadd.f32 %v505_v17, %v466_v25  ;;  %v562_v3 = vadd.f32 %v561_v18, %v482_v26 }
  0xc5   :  { %v1528_v63 = vadd.f32 %v498_v30, %v1421_v19  ;;  %v1531_v0 = vadd.f32 %v554_v31, %v1433_v29  ;;  %v1534_v49 = vadd.f32 %v492_v34, %v1435_v11  ;;  %v1537_v50 = vadd.f32 %v548_v35, %v1437_v12 }
  0xc6   :  { %v1540_v1 = vadd.f32 %v504_v59, %v1477_v44  ;;  %v1543_v5 = vadd.f32 %v560_v23, %v1480_v45  ;;  %v507_v32 = vrot.slane %v506_v39, 2  ;;  %v563_v54 = vrot.slane %v562_v3, 2 }
  0xc7   :  { %v666_v19 = vmul.f32 %v1520_v48, %v606_v36  ;;  %v674_v29 = vmul.f32 %v1525_v22, %v606_v36  ;;  %v665_v55 = vmul.f32 %v1520_v48, %v602_v33  ;;  %v673_v11 = vmul.f32 %v1525_v22, %v602_v33 }
  0xc8   :  { %v508_v46 = vadd.f32 %v507_v32, %v506_v39  ;;  %v564_v12 = vadd.f32 %v563_v54, %v562_v3  ;;  %v698_v51 = vmul.f32 %v1520_v48, %v638_v20  ;;  %v706_v44 = vmul.f32 %v1525_v22, %v638_v20 }
  0xc9   :  { %v682_v6 = vmin.f32 %v666_v19, %v674_v29  ;;  %v690_v8 = vmax.f32 %v666_v19, %v674_v29  ;;  %v681_v45 = vmin.f32 %v665_v55, %v673_v11  ;;  %v689_v13 = vmax.f32 %v665_v55, %v673_v11 }
  0xca   :  { %v509_v15 = vrot.slane %v508_v46, 1  ;;  %v565_v21 = vrot.slane %v564_v12, 1  ;;  %v714_v7 = vmin.f32 %v698_v51, %v706_v44  ;;  %v730_v25 = vmax.f32 %v698_v51, %v706_v44 }
  0xcb   :  { %v697_v36 = vmul.f32 %v1520_v48, %v634_v56  ;;  %v705_v26 = vmul.f32 %v1525_v22, %v634_v56  ;;  %v443_v33 = vmul.f32 %v1466_v37, %v392_v9  ;;  %v451_v27 = vmul.f32 %v1471_v42, %v392_v9  ;;  %v610_v9 = vpop.permute.xlu0 %609 }
  0xcc   :  { %v510_v57 = vadd.f32 %v509_v15, %v508_v46  ;;  %v566_v20 = vadd.f32 %v565_v21, %v564_v12  ;;  %v722_v58 = vmin.f32 %v682_v6, %v714_v7  ;;  %v738_v10 = vmax.f32 %v690_v8, %v730_v25  ;;  %v396_v46 = vpop.permute.xlu1 %395 }
  0xcd   :  { %v713_v16 = vmin.f32 %v697_v36, %v705_v26  ;;  %v729_v17 = vmax.f32 %v697_v36, %v705_v26  ;;  %v459_v18 = vmin.f32 %v443_v33, %v451_v27  ;;  %v475_v30 = vmax.f32 %v443_v33, %v451_v27 }
  0xce   :  { %v1556_v31 = vadd.f32 %v510_v57, %v1439_v38  ;;  %v1559_v34 = vadd.f32 %v566_v20, %v1474_v43  ;;  %v751_v35 = vrot.slane %v722_v58, 4  ;;  %v807_v56 = vrot.slane %v738_v10, 4 }
  0xcf   :  { %v721_v59 = vmin.f32 %v681_v45, %v713_v16  ;;  %v737_v23 = vmax.f32 %v689_v13, %v729_v17  ;;  %v411_v39 = vmul.f32 %v1466_v37, %v360_v14  ;;  %v419_v3 = vmul.f32 %v1471_v42, %v360_v14 }
  0xd0   :  { %v752_v32 = vadd.f32 %v751_v35, %v722_v58  ;;  %v808_v54 = vadd.f32 %v807_v56, %v738_v10  ;;  %v699_v19 = vmul.f32 %v1520_v48, %v642_v28  ;;  %v707_v29 = vmul.f32 %v1525_v22, %v642_v28  ;;  %v364_v28 = vpop.permute.xlu0 %363 }
  0xd1   :  { %v745_v38 = vrot.slane %v721_v59, 4  ;;  %v801_v55 = vrot.slane %v737_v23, 4  ;;  %v427_v11 = vmin.f32 %v411_v39, %v419_v3  ;;  %v435_v43 = vmax.f32 %v411_v39, %v419_v3 }
  0xd2   :  { %v753_v12 = vrot.slane %v752_v32, 2  ;;  %v809_v51 = vrot.slane %v808_v54, 2  ;;  %v715_v44 = vmin.f32 %v699_v19, %v707_v29  ;;  %v731_v6 = vmax.f32 %v699_v19, %v707_v29 }
  0xd3   :  { %v746_v8 = vadd.f32 %v745_v38, %v721_v59  ;;  %v802_v45 = vadd.f32 %v801_v55, %v737_v23  ;;  %v467_v13 = vmin.f32 %v427_v11, %v459_v18  ;;  %v483_v14 = vmax.f32 %v435_v43, %v475_v30  ;;  %v646_v30 = vpop.permute.xlu1 %645 }
  0xd4   :  { %v754_v15 = vadd.f32 %v753_v12, %v752_v32  ;;  %v810_v21 = vadd.f32 %v809_v51, %v808_v54  ;;  %v667_v7 = vmul.f32 %v1520_v48, %v610_v9  ;;  %v675_v25 = vmul.f32 %v1525_v22, %v610_v9 }
  0xd5   :  { %v747_v36 = vrot.slane %v746_v8, 2  ;;  %v803_v26 = vrot.slane %v802_v45, 2  ;;  %v511_v33 = vrot.slane %v467_v13, 4  ;;  %v567_v27 = vrot.slane %v483_v14, 4 }
  0xd6   :  { %v755_v57 = vrot.slane %v754_v15, 1  ;;  %v811_v20 = vrot.slane %v810_v21, 1  ;;  %v683_v58 = vmin.f32 %v667_v7, %v675_v25  ;;  %v691_v10 = vmax.f32 %v667_v7, %v675_v25 }
  0xd7   :  { %v748_v16 = vadd.f32 %v747_v36, %v746_v8  ;;  %v804_v17 = vadd.f32 %v803_v26, %v802_v45  ;;  %v512_v35 = vadd.f32 %v511_v33, %v467_v13  ;;  %v568_v18 = vadd.f32 %v567_v27, %v483_v14  ;;  %v614_v8 = vpop.permute.xlu0 %613 }
  0xd8   :  { %v756_v56 = vadd.f32 %v755_v57, %v754_v15  ;;  %v812_v59 = vadd.f32 %v811_v20, %v810_v21  ;;  %v723_v23 = vmin.f32 %v683_v58, %v715_v44  ;;  %v739_v39 = vmax.f32 %v691_v10, %v731_v6  ;;  %v864_v21 = vpop.permute.xlu1 %863 }
  0xd9   :  { %v749_v3 = vrot.slane %v748_v16, 1  ;;  %v805_v9 = vrot.slane %v804_v17, 1  ;;  %v513_v32 = vrot.slane %v512_v35, 2  ;;  %v569_v54 = vrot.slane %v568_v18, 2 }
  0xda   :  { %v1568_v19 = vadd.f32 %v756_v56, %v1528_v63  ;;  %v1571_v29 = vadd.f32 %v812_v59, %v1531_v0  ;;  %v757_v38 = vrot.slane %v723_v23, 4  ;;  %v813_v55 = vrot.slane %v739_v39, 4 }
  0xdb   :  { %v750_v11 = vadd.f32 %v749_v3, %v748_v16  ;;  %v806_v43 = vadd.f32 %v805_v9, %v804_v17  ;;  %v514_v12 = vadd.f32 %v513_v32, %v512_v35  ;;  %v570_v51 = vadd.f32 %v569_v54, %v568_v18  ;;  %v1598_v17 = vld [vmem:[%s1821_s2 + $0x18] sm:$0xff]  ;;  %v860_v35 = vpop.permute.xlu0 %859 }
  0xdc   :  { %v758_v45 = vadd.f32 %v757_v38, %v723_v23  ;;  %v814_v44 = vadd.f32 %v813_v55, %v739_v39  ;;  %v444_v6 = vmul.f32 %v1466_v37, %v396_v46  ;;  %v452_v13 = vmul.f32 %v1471_v42, %v396_v46  ;;  %v896_v3 = vpop.permute.xlu1 %895 }
  0xdd   :  { %v1576_v14 = vadd.f32 %v750_v11, %v1534_v49  ;;  %v1579_v63 = vadd.f32 %v806_v43, %v1537_v50  ;;  %v515_v0 = vrot.slane %v514_v12, 1  ;;  %v571_v15 = vrot.slane %v570_v51, 1 }
  0xde   :  { %v1584_v7 = vadd.f32 %v331_v61, %v1484_v2  ;;  %v759_v25 = vrot.slane %v758_v45, 2  ;;  %v815_v36 = vrot.slane %v814_v44, 2  ;;  %v460_v26 = vmin.f32 %v444_v6, %v452_v13 }
  0xdf   :  { %v516_v33 = vadd.f32 %v515_v0, %v514_v12  ;;  %v476_v27 = vmax.f32 %v444_v6, %v452_v13  ;;  %v412_v46 = vmul.f32 %v1466_v37, %v364_v28  ;;  %v420_v49 = vmul.f32 %v1471_v42, %v364_v28  ;;  %v1603_v28 = vld [vmem:[%s1822_s3 + $0x18] sm:$0xff] }
  0xe0   :  { %v760_v57 = vadd.f32 %v759_v25, %v758_v45  ;;  %v816_v50 = vadd.f32 %v815_v36, %v814_v44  ;;  %v700_v20 = vmul.f32 %v1520_v48, %v646_v30  ;;  %v708_v58 = vmul.f32 %v1525_v22, %v646_v30 }
  0xe1   :  { %v1593_v2 = vadd.f32 %v269_v62, %v1486_v60  ;;  %v572_v61 = vadd.f32 %v571_v15, %v570_v51  ;;  %v428_v10 = vmin.f32 %v412_v46, %v420_v49  ;;  %v436_v16 = vmax.f32 %v412_v46, %v420_v49 }
  0xe2   :  { %v761_v18 = vrot.slane %v760_v57, 1  ;;  %v817_v30 = vrot.slane %v816_v50, 1  ;;  %v716_v56 = vmin.f32 %v700_v20, %v708_v58  ;;  %v732_v59 = vmax.f32 %v700_v20, %v708_v58 }
  0xe3   :  { %v468_v60 = vmin.f32 %v428_v10, %v460_v26  ;;  %v484_v62 = vmax.f32 %v436_v16, %v476_v27  ;;  %v668_v23 = vmul.f32 %v1520_v48, %v614_v8  ;;  %v676_v39 = vmul.f32 %v1525_v22, %v614_v8  ;;  %v400_v27 = vpop.permute.xlu1 %399 }
  0xe4   :  { %v1610_v9 = vadd.f32 %v325_v4, %v1488_v47  ;;  %v1613_v32 = vadd.f32 %v516_v33, %v1496_v40  ;;  %v924_v54 = vmul.f32 %v1598_v17, %v864_v21  ;;  %v932_v38 = vmul.f32 %v1603_v28, %v864_v21  ;;  %v892_v40 = vpop.permute.xlu0 %891 }
  0xe5   :  { %v517_v55 = vrot.slane %v468_v60, 4  ;;  %v573_v11 = vrot.slane %v484_v62, 4  ;;  %v684_v43 = vmin.f32 %v668_v23, %v676_v39  ;;  %v692_v12 = vmax.f32 %v668_v23, %v676_v39 }
  0xe6   :  { %v1618_v51 = vadd.f32 %v572_v61, %v1498_v41  ;;  %v762_v8 = vadd.f32 %v761_v18, %v760_v57  ;;  %v818_v45 = vadd.f32 %v817_v30, %v816_v50  ;;  %v940_v44 = vmin.f32 %v924_v54, %v932_v38 }
  0xe7   :  { %v518_v6 = vadd.f32 %v517_v55, %v468_v60  ;;  %v574_v47 = vadd.f32 %v573_v11, %v484_v62  ;;  %v724_v4 = vmin.f32 %v684_v43, %v716_v56  ;;  %v740_v13 = vmax.f32 %v692_v12, %v732_v59 }
  0xe8   :  { %v923_v0 = vmul.f32 %v1598_v17, %v860_v35  ;;  %v931_v15 = vmul.f32 %v1603_v28, %v860_v35  ;;  %v956_v21 = vmul.f32 %v1598_v17, %v896_v3  ;;  %v964_v25 = vmul.f32 %v1603_v28, %v896_v3  ;;  %v368_v23 = vpop.permute.xlu0 %367 }
  0xe9   :  { %v519_v36 = vrot.slane %v518_v6, 2  ;;  %v575_v26 = vrot.slane %v574_v47, 2  ;;  %v763_v41 = vrot.slane %v724_v4, 4  ;;  %v819_v33 = vrot.slane %v740_v13, 4 }
  0xea   :  { %v948_v46 = vmax.f32 %v924_v54, %v932_v38  ;;  %v939_v49 = vmin.f32 %v923_v0, %v931_v15  ;;  %v972_v57 = vmin.f32 %v956_v21, %v964_v25  ;;  %v988_v50 = vmax.f32 %v956_v21, %v964_v25 }
  0xeb   :  { %v520_v20 = vadd.f32 %v519_v36, %v518_v6  ;;  %v576_v58 = vadd.f32 %v575_v26, %v574_v47  ;;  %v764_v61 = vadd.f32 %v763_v41, %v724_v4  ;;  %v820_v10 = vadd.f32 %v819_v33, %v740_v13  ;;  %v650_v6 = vpop.permute.xlu1 %649 }
  0xec   :  { %v980_v16 = vmin.f32 %v940_v44, %v972_v57  ;;  %v996_v18 = vmax.f32 %v948_v46, %v988_v50  ;;  %v955_v35 = vmul.f32 %v1598_v17, %v892_v40  ;;  %v963_v30 = vmul.f32 %v1603_v28, %v892_v40  ;;  %v618_v50 = vpop.permute.xlu0 %617 }
  0xed   :  { %v521_v56 = vrot.slane %v520_v20, 1  ;;  %v765_v59 = vrot.slane %v764_v61, 2  ;;  %v821_v60 = vrot.slane %v820_v10, 2  ;;  %v947_v62 = vmax.f32 %v923_v0, %v931_v15 }
  0xee   :  { %v1009_v39 = vrot.slane %v980_v16, 4  ;;  %v1065_v3 = vrot.slane %v996_v18, 4  ;;  %v971_v54 = vmin.f32 %v955_v35, %v963_v30  ;;  %v987_v38 = vmax.f32 %v955_v35, %v963_v30 }
  0xef   :  { %v522_v55 = vadd.f32 %v521_v56, %v520_v20  ;;  %v577_v11 = vrot.slane %v576_v58, 1  ;;  %v766_v43 = vadd.f32 %v765_v59, %v764_v61  ;;  %v822_v12 = vadd.f32 %v821_v60, %v820_v10 }
  0xf0   :  { %v1010_v44 = vadd.f32 %v1009_v39, %v980_v16  ;;  %v1066_v47 = vadd.f32 %v1065_v3, %v996_v18  ;;  %v979_v4 = vmin.f32 %v939_v49, %v971_v54  ;;  %v995_v13 = vmax.f32 %v947_v62, %v987_v38  ;;  %v900_v18 = vpop.permute.xlu1 %899 }
  0xf1   :  { %v1627_v40 = vadd.f32 %v762_v8, %v1540_v1  ;;  %v1630_v21 = vadd.f32 %v818_v45, %v1543_v5  ;;  %v767_v0 = vrot.slane %v766_v43, 1  ;;  %v823_v15 = vrot.slane %v822_v12, 1 }
  0xf2   :  { %v1011_v25 = vrot.slane %v1010_v44, 2  ;;  %v1067_v36 = vrot.slane %v1066_v47, 2  ;;  %v1003_v26 = vrot.slane %v979_v4, 4  ;;  %v1059_v41 = vrot.slane %v995_v13, 4 }
  0xf3   :  { %v1633_v33 = vadd.f32 %v522_v55, %v1482_v53  ;;  %v578_v46 = vadd.f32 %v577_v11, %v576_v58  ;;  %v445_v57 = vmul.f32 %v1466_v37, %v400_v27  ;;  %v453_v49 = vmul.f32 %v1471_v42, %v400_v27 }
  0xf4   :  { %v1012_v1 = vadd.f32 %v1011_v25, %v1010_v44  ;;  %v1068_v8 = vadd.f32 %v1067_v36, %v1066_v47  ;;  %v1004_v20 = vadd.f32 %v1003_v26, %v979_v4  ;;  %v1060_v5 = vadd.f32 %v1059_v41, %v995_v13 }
  0xf5   :  { %v768_v45 = vadd.f32 %v767_v0, %v766_v43  ;;  %v824_v61 = vadd.f32 %v823_v15, %v822_v12  ;;  %v461_v10 = vmin.f32 %v445_v57, %v453_v49  ;;  %v477_v16 = vmax.f32 %v445_v57, %v453_v49  ;;  %v868_v12 = vpop.permute.xlu0 %867  ;;  %v404_v15 = vpop.permute.xlu1 %403 }
  0xf6   :  { %v1013_v35 = vrot.slane %v1012_v1, 1  ;;  %v1069_v30 = vrot.slane %v1068_v8, 1  ;;  %v1005_v56 = vrot.slane %v1004_v20, 2  ;;  %v1061_v53 = vrot.slane %v1060_v5, 2 }
  0xf7   :  { %v413_v58 = vmul.f32 %v1466_v37, %v368_v23  ;;  %v421_v59 = vmul.f32 %v1471_v42, %v368_v23  ;;  %v701_v27 = vmul.f32 %v1520_v48, %v650_v6  ;;  %v709_v60 = vmul.f32 %v1525_v22, %v650_v6 }
  0xf8   :  { %v1642_v62 = vadd.f32 %v578_v46, %v1494_v24  ;;  %v1014_v39 = vadd.f32 %v1013_v35, %v1012_v1  ;;  %v1070_v3 = vadd.f32 %v1069_v30, %v1068_v8  ;;  %v1006_v54 = vadd.f32 %v1005_v56, %v1004_v20 }
  0xf9   :  { %v1645_v38 = vadd.f32 %v768_v45, %v1556_v31  ;;  %v1648_v55 = vadd.f32 %v824_v61, %v1559_v34  ;;  %v429_v11 = vmin.f32 %v413_v58, %v421_v59  ;;  %v437_v43 = vmax.f32 %v413_v58, %v421_v59  ;;  %v372_v61 = vpop.permute.xlu0 %371  ;;  %v654_v58 = vpop.permute.xlu1 %653 }
  0xfa   :  { %v1007_v23 = vrot.slane %v1006_v54, 1  ;;  %v1062_v44 = vadd.f32 %v1061_v53, %v1060_v5  ;;  %v717_v47 = vmin.f32 %v701_v27, %v709_v60  ;;  %v733_v4 = vmax.f32 %v701_v27, %v709_v60 }
  0xfb   :  { %v469_v6 = vmin.f32 %v429_v11, %v461_v10  ;;  %v485_v13 = vmax.f32 %v437_v43, %v477_v16  ;;  %v669_v24 = vmul.f32 %v1520_v48, %v618_v50  ;;  %v677_v0 = vmul.f32 %v1525_v22, %v618_v50 }
  0xfc   :  { %v1653_v31 = vadd.f32 %v1014_v39, %v1568_v19  ;;  %v1656_v34 = vadd.f32 %v1070_v3, %v1571_v29  ;;  %v957_v25 = vmul.f32 %v1598_v17, %v900_v18  ;;  %v965_v36 = vmul.f32 %v1603_v28, %v900_v18 }
  0xfd   :  { %v523_v26 = vrot.slane %v469_v6, 4  ;;  %v579_v41 = vrot.slane %v485_v13, 4  ;;  %v685_v46 = vmin.f32 %v669_v24, %v677_v0  ;;  %v693_v57 = vmax.f32 %v669_v24, %v677_v0 }
  0xfe   :  { %v1008_v49 = vadd.f32 %v1007_v23, %v1006_v54  ;;  %v1063_v1 = vrot.slane %v1062_v44, 1  ;;  %v973_v8 = vmin.f32 %v957_v25, %v965_v36  ;;  %v989_v20 = vmax.f32 %v957_v25, %v965_v36 }
  0xff   :  { %v524_v50 = vadd.f32 %v523_v26, %v469_v6  ;;  %v580_v5 = vadd.f32 %v579_v41, %v485_v13  ;;  %v725_v45 = vmin.f32 %v685_v46, %v717_v47  ;;  %v741_v19 = vmax.f32 %v693_v57, %v733_v4 }
 0x100   :  { %v925_v29 = vmul.f32 %v1598_v17, %v868_v12  ;;  %v933_v10 = vmul.f32 %v1603_v28, %v868_v12  ;;  %v446_v16 = vmul.f32 %v1466_v37, %v404_v15  ;;  %v454_v18 = vmul.f32 %v1471_v42, %v404_v15  ;;  %v622_v15 = vpop.permute.xlu0 %621 }
 0x101   :  { %v525_v35 = vrot.slane %v524_v50, 2  ;;  %v581_v30 = vrot.slane %v580_v5, 2  ;;  %v769_v56 = vrot.slane %v725_v45, 4  ;;  %v825_v53 = vrot.slane %v741_v19, 4 }
 0x102   :  { %v941_v59 = vmin.f32 %v925_v29, %v933_v10  ;;  %v949_v27 = vmax.f32 %v925_v29, %v933_v10  ;;  %v462_v60 = vmin.f32 %v446_v16, %v454_v18  ;;  %v478_v39 = vmax.f32 %v446_v16, %v454_v18 }
 0x103   :  { %v526_v3 = vadd.f32 %v525_v35, %v524_v50  ;;  %v582_v54 = vadd.f32 %v581_v30, %v580_v5  ;;  %v770_v11 = vadd.f32 %v769_v56, %v725_v45  ;;  %v826_v43 = vadd.f32 %v825_v53, %v741_v19 }
 0x104   :  { %v981_v23 = vmin.f32 %v941_v59, %v973_v8  ;;  %v997_v47 = vmax.f32 %v949_v27, %v989_v20  ;;  %v414_v12 = vmul.f32 %v1466_v37, %v372_v61  ;;  %v422_v4 = vmul.f32 %v1471_v42, %v372_v61  ;;  %v904_v20 = vpop.permute.xlu1 %903  ;;  %v872_v56 = vpop.permute.xlu0 %871 }
 0x105   :  { %v1064_v6 = vadd.f32 %v1063_v1, %v1062_v44  ;;  %v583_v13 = vrot.slane %v582_v54, 1  ;;  %v771_v24 = vrot.slane %v770_v11, 2  ;;  %v827_v0 = vrot.slane %v826_v43, 2 }
 0x106   :  { %v1015_v25 = vrot.slane %v981_v23, 4  ;;  %v1071_v36 = vrot.slane %v997_v47, 4  ;;  %v430_v26 = vmin.f32 %v414_v12, %v422_v4  ;;  %v438_v41 = vmax.f32 %v414_v12, %v422_v4 }
 0x107   :  { %v1667_v46 = vadd.f32 %v1008_v49, %v1576_v14  ;;  %v527_v57 = vrot.slane %v526_v3, 1  ;;  %v772_v50 = vadd.f32 %v771_v24, %v770_v11  ;;  %v828_v8 = vadd.f32 %v827_v0, %v826_v43 }
 0x108   :  { %v1016_v5 = vadd.f32 %v1015_v25, %v981_v23  ;;  %v1072_v37 = vadd.f32 %v1071_v36, %v997_v47  ;;  %v470_v45 = vmin.f32 %v430_v26, %v462_v60  ;;  %v486_v42 = vmax.f32 %v438_v41, %v478_v39  ;;  %v658_v23 = vpop.permute.xlu1 %657 }
 0x109   :  { %v584_v44 = vadd.f32 %v583_v13, %v582_v54  ;;  %v773_v1 = vrot.slane %v772_v50, 1  ;;  %v829_v19 = vrot.slane %v828_v8, 1  ;;  %v702_v61 = vmul.f32 %v1520_v48, %v654_v58 }
 0x10a   :  { %v1017_v29 = vrot.slane %v1016_v5, 2  ;;  %v1073_v10 = vrot.slane %v1072_v37, 2  ;;  %v529_v16 = vrot.slane %v470_v45, 4  ;;  %v585_v18 = vrot.slane %v486_v42, 4 }
 0x10b   :  { %v1671_v14 = vadd.f32 %v1064_v6, %v1579_v63  ;;  %v1673_v49 = vadd.f32 %v527_v57, %v526_v3  ;;  %v774_v35 = vadd.f32 %v773_v1, %v772_v50  ;;  %v710_v30 = vmul.f32 %v1525_v22, %v654_v58  ;;  %v626_v50 = vpop.permute.xlu0 %625 }
 0x10c   :  { %v1018_v53 = vadd.f32 %v1017_v29, %v1016_v5  ;;  %v1074_v59 = vadd.f32 %v1073_v10, %v1072_v37  ;;  %v530_v27 = vadd.f32 %v529_v16, %v470_v45  ;;  %v586_v60 = vadd.f32 %v585_v18, %v486_v42 }
 0x10d   :  { %v1677_v39 = vadd.f32 %v584_v44, %v1610_v9  ;;  %v830_v54 = vadd.f32 %v829_v19, %v828_v8  ;;  %v718_v11 = vmin.f32 %v702_v61, %v710_v30  ;;  %v670_v43 = vmul.f32 %v1520_v48, %v622_v15 }
 0x10e   :  { %v1019_v63 = vrot.slane %v1018_v53, 1  ;;  %v1075_v47 = vrot.slane %v1074_v59, 1  ;;  %v531_v3 = vrot.slane %v530_v27, 2  ;;  %v587_v12 = vrot.slane %v586_v60, 2 }
 0x10f   :  { %v734_v4 = vmax.f32 %v702_v61, %v710_v30  ;;  %v678_v58 = vmul.f32 %v1525_v22, %v622_v15  ;;  %v958_v6 = vmul.f32 %v1598_v17, %v904_v20  ;;  %v966_v13 = vmul.f32 %v1603_v28, %v904_v20 }
 0x110   :  { %v1684_v24 = vadd.f32 %v774_v35, %v1613_v32  ;;  %v1020_v9 = vadd.f32 %v1019_v63, %v1018_v53  ;;  %v1076_v0 = vadd.f32 %v1075_v47, %v1074_v59  ;;  %v1686_v25 = vadd.f32 %v531_v3, %v530_v27 }
 0x111   :  { %v1689_v36 = vadd.f32 %v830_v54, %v1618_v51  ;;  %v686_v26 = vmin.f32 %v670_v43, %v678_v58  ;;  %v694_v41 = vmax.f32 %v670_v43, %v678_v58  ;;  %v926_v57 = vmul.f32 %v1598_v17, %v872_v56  ;;  %v908_v51 = vpop.permute.xlu1 %907 }
 0x112   :  { %v1693_v15 = vadd.f32 %v1020_v9, %v1627_v40  ;;  %v1695_v8 = vadd.f32 %v587_v12, %v586_v60  ;;  %v974_v20 = vmin.f32 %v958_v6, %v966_v13  ;;  %v990_v32 = vmax.f32 %v958_v6, %v966_v13  ;;  %v876_v60 = vpop.permute.xlu0 %875 }
 0x113   :  { %v726_v5 = vmin.f32 %v686_v26, %v718_v11  ;;  %v742_v37 = vmax.f32 %v694_v41, %v734_v4  ;;  %v934_v45 = vmul.f32 %v1603_v28, %v872_v56  ;;  %v703_v42 = vmul.f32 %v1520_v48, %v658_v23 }
 0x114   :  { %v1700_v44 = vadd.f32 %v1076_v0, %v1630_v21  ;;  %v533_v1 = vrot.slane %v1686_v25, 1  ;;  %v711_v19 = vmul.f32 %v1525_v22, %v658_v23  ;;  %v671_v40 = vmul.f32 %v1520_v48, %v626_v50 }
 0x115   :  { %v775_v61 = vrot.slane %v726_v5, 4  ;;  %v831_v29 = vrot.slane %v742_v37, 4  ;;  %v942_v10 = vmin.f32 %v926_v57, %v934_v45  ;;  %v950_v16 = vmax.f32 %v926_v57, %v934_v45  ;;  %v662_v9 = vpop.permute.xlu1 %661 }
 0x116   :  { %v719_v18 = vmin.f32 %v703_v42, %v711_v19  ;;  %v735_v35 = vmax.f32 %v703_v42, %v711_v19  ;;  %v679_v30 = vmul.f32 %v1525_v22, %v626_v50  ;;  %v959_v56 = vmul.f32 %v1598_v17, %v908_v51  ;;  %v630_v19 = vpop.permute.xlu0 %629 }
 0x117   :  { %v776_v53 = vadd.f32 %v775_v61, %v726_v5  ;;  %v832_v59 = vadd.f32 %v831_v29, %v742_v37  ;;  %v982_v21 = vmin.f32 %v942_v10, %v974_v20  ;;  %v998_v27 = vmax.f32 %v950_v16, %v990_v32 }
 0x118   :  { %v589_v54 = vrot.slane %v1695_v8, 1  ;;  %v687_v11 = vmin.f32 %v671_v40, %v679_v30  ;;  %v695_v43 = vmax.f32 %v671_v40, %v679_v30  ;;  %v967_v23 = vmul.f32 %v1603_v28, %v908_v51 }
 0x119   :  { %v777_v63 = vrot.slane %v776_v53, 2  ;;  %v833_v47 = vrot.slane %v832_v59, 2  ;;  %v1021_v3 = vrot.slane %v982_v21, 4  ;;  %v1077_v12 = vrot.slane %v998_v27, 4 }
 0x11a   :  { %v727_v4 = vmin.f32 %v687_v11, %v719_v18  ;;  %v743_v58 = vmax.f32 %v695_v43, %v735_v35  ;;  %v975_v6 = vmin.f32 %v959_v56, %v967_v23  ;;  %v927_v13 = vmul.f32 %v1598_v17, %v876_v60 }
 0x11b   :  { %v778_v0 = vadd.f32 %v777_v63, %v776_v53  ;;  %v834_v26 = vadd.f32 %v833_v47, %v832_v59  ;;  %v1022_v41 = vadd.f32 %v1021_v3, %v982_v21  ;;  %v1078_v57 = vadd.f32 %v1077_v12, %v998_v27  ;;  %v912_v27 = vpop.permute.xlu1 %911 }
 0x11c   :  { %v781_v50 = vrot.slane %v727_v4, 4  ;;  %v837_v20 = vrot.slane %v743_v58, 4  ;;  %v991_v32 = vmax.f32 %v959_v56, %v967_v23  ;;  %v935_v5 = vmul.f32 %v1603_v28, %v876_v60 }
 0x11d   :  { %v835_v37 = vrot.slane %v834_v26, 1  ;;  %v1023_v45 = vrot.slane %v1022_v41, 2  ;;  %v1079_v42 = vrot.slane %v1078_v57, 2  ;;  %v704_v51 = vmul.f32 %v1520_v48, %v662_v9 }
 0x11e   :  { %v782_v40 = vadd.f32 %v781_v50, %v727_v4  ;;  %v838_v61 = vadd.f32 %v837_v20, %v743_v58  ;;  %v943_v29 = vmin.f32 %v927_v13, %v935_v5  ;;  %v951_v10 = vmax.f32 %v927_v13, %v935_v5 }
 0x11f   :  { %v779_v16 = vrot.slane %v778_v0, 1  ;;  %v836_v18 = vadd.f32 %v835_v37, %v834_v26  ;;  %v1024_v35 = vadd.f32 %v1023_v45, %v1022_v41  ;;  %v1080_v30 = vadd.f32 %v1079_v42, %v1078_v57  ;;  %v880_v26 = vpop.permute.xlu0 %879 }
 0x120   :  { %v783_v53 = vrot.slane %v782_v40, 2  ;;  %v839_v59 = vrot.slane %v838_v61, 2  ;;  %v983_v21 = vmin.f32 %v943_v29, %v975_v6  ;;  %v999_v56 = vmax.f32 %v951_v10, %v991_v32 }
 0x121   :  { %v1713_v60 = vadd.f32 %v533_v1, %v1686_v25  ;;  %v1025_v11 = vrot.slane %v1024_v35, 1  ;;  %v1081_v43 = vrot.slane %v1080_v30, 1  ;;  %v712_v23 = vmul.f32 %v1525_v22, %v662_v9 }
 0x122   :  { %v784_v63 = vadd.f32 %v783_v53, %v782_v40  ;;  %v840_v47 = vadd.f32 %v839_v59, %v838_v61  ;;  %v1027_v3 = vrot.slane %v983_v21, 4  ;;  %v1083_v12 = vrot.slane %v999_v56, 4 }
 0x123   :  { %v1717_v4 = vadd.f32 %v589_v54, %v1695_v8  ;;  %v1719_v58 = vadd.f32 %v779_v16, %v778_v0  ;;  %v1722_v6 = vadd.f32 %v836_v18, %v1642_v62  ;;  %v1026_v13 = vadd.f32 %v1025_v11, %v1024_v35  ;;  %v916_v62 = vpop.permute.xlu1 %915  ;;  %v884_v16 = vpop.permute.xlu0 %883 }
 0x124   :  { %v1082_v25 = vadd.f32 %v1081_v43, %v1080_v30  ;;  %v1028_v1 = vadd.f32 %v1027_v3, %v983_v21  ;;  %v1084_v41 = vadd.f32 %v1083_v12, %v999_v56  ;;  %v720_v57 = vmin.f32 %v704_v51, %v712_v23 }
 0x125   :  { %v785_v50 = vrot.slane %v784_v63, 1  ;;  %v736_v9 = vmax.f32 %v704_v51, %v712_v23  ;;  %v672_v20 = vmul.f32 %v1520_v48, %v630_v19  ;;  %v680_v32 = vmul.f32 %v1525_v22, %v630_v19 }
 0x126   :  { %v1727_v8 = vadd.f32 %v1026_v13, %v1645_v38  ;;  %v841_v54 = vrot.slane %v840_v47, 1  ;;  %v1029_v0 = vrot.slane %v1028_v1, 2  ;;  %v1085_v5 = vrot.slane %v1084_v41, 2 }
 0x127   :  { %v688_v37 = vmin.f32 %v672_v20, %v680_v32  ;;  %v696_v45 = vmax.f32 %v672_v20, %v680_v32  ;;  %v960_v42 = vmul.f32 %v1598_v17, %v912_v27  ;;  %v968_v40 = vmul.f32 %v1603_v28, %v912_v27  ;;  %v920_v12 = vpop.permute.xlu1 %919  ;;  %v888_v32 = vpop.permute.xlu0 %887 }
 0x128   :  { %v1030_v61 = vadd.f32 %v1029_v0, %v1028_v1  ;;  %v1086_v29 = vadd.f32 %v1085_v5, %v1084_v41  ;;  %v928_v51 = vmul.f32 %v1598_v17, %v880_v26  ;;  %v936_v48 = vmul.f32 %v1603_v28, %v880_v26 }
 0x129   :  { %v728_v22 = vmin.f32 %v688_v37, %v720_v57  ;;  %v744_v19 = vmax.f32 %v696_v45, %v736_v9  ;;  %v976_v38 = vmin.f32 %v960_v42, %v968_v40  ;;  %v992_v10 = vmax.f32 %v960_v42, %v968_v40 }
 0x12a   :  { %v1734_v18 = vadd.f32 %v1082_v25, %v1648_v55  ;;  %v1736_v35 = vadd.f32 %v785_v50, %v784_v63  ;;  %v944_v30 = vmin.f32 %v928_v51, %v936_v48  ;;  %v952_v53 = vmax.f32 %v928_v51, %v936_v48 }
 0x12b   :  { %v787_v59 = vrot.slane %v728_v22, 4  ;;  %v843_v21 = vrot.slane %v744_v19, 4  ;;  %v961_v56 = vmul.f32 %v1598_v17, %v916_v62  ;;  %v969_v27 = vmul.f32 %v1603_v28, %v916_v62 }
 0x12c   :  { %v1740_v11 = vadd.f32 %v841_v54, %v840_v47  ;;  %v1087_v43 = vrot.slane %v1086_v29, 1  ;;  %v984_v23 = vmin.f32 %v944_v30, %v976_v38  ;;  %v1000_v3 = vmax.f32 %v952_v53, %v992_v10 }
 0x12d   :  { %v1031_v13 = vrot.slane %v1030_v61, 1  ;;  %v788_v26 = vadd.f32 %v787_v59, %v728_v22  ;;  %v844_v55 = vadd.f32 %v843_v21, %v744_v19  ;;  %v977_v25 = vmin.f32 %v961_v56, %v969_v27 }
 0x12e   :  { %v1033_v63 = vrot.slane %v984_v23, 4  ;;  %v1089_v1 = vrot.slane %v1000_v3, 4  ;;  %v993_v41 = vmax.f32 %v961_v56, %v969_v27  ;;  %v929_v57 = vmul.f32 %v1598_v17, %v884_v16 }
 0x12f   :  { %v789_v50 = vrot.slane %v788_v26, 2  ;;  %v845_v9 = vrot.slane %v844_v55, 2  ;;  %v937_v20 = vmul.f32 %v1603_v28, %v884_v16  ;;  %v962_v47 = vmul.f32 %v1598_v17, %v920_v12 }
 0x130   :  { %v1088_v54 = vadd.f32 %v1087_v43, %v1086_v29  ;;  %v1034_v0 = vadd.f32 %v1033_v63, %v984_v23  ;;  %v1090_v5 = vadd.f32 %v1089_v1, %v1000_v3  ;;  %v970_v62 = vmul.f32 %v1603_v28, %v920_v12 }
 0x131   :  { %v790_v37 = vadd.f32 %v789_v50, %v788_v26  ;;  %v1746_v45 = vadd.f32 %v845_v9, %v844_v55  ;;  %v945_v42 = vmin.f32 %v929_v57, %v937_v20  ;;  %v953_v40 = vmax.f32 %v929_v57, %v937_v20 }
 0x132   :  { %v1032_v51 = vadd.f32 %v1031_v13, %v1030_v61  ;;  %v1035_v48 = vrot.slane %v1034_v0, 2  ;;  %v1091_v22 = vrot.slane %v1090_v5, 2  ;;  %v930_v19 = vmul.f32 %v1598_v17, %v888_v32 }
 0x133   :  { %v791_v38 = vrot.slane %v790_v37, 1  ;;  %v985_v10 = vmin.f32 %v945_v42, %v977_v25  ;;  %v1001_v16 = vmax.f32 %v953_v40, %v993_v41  ;;  %v978_v30 = vmin.f32 %v962_v47, %v970_v62 }
 0x134   :  { %v1036_v53 = vadd.f32 %v1035_v48, %v1034_v0  ;;  %v1092_v29 = vadd.f32 %v1091_v22, %v1090_v5  ;;  %v994_v59 = vmax.f32 %v962_v47, %v970_v62  ;;  %v938_v21 = vmul.f32 %v1603_v28, %v888_v32 }
 0x135   :  { %v1751_v56 = vadd.f32 %v1088_v54, %v1689_v36  ;;  %v847_v27 = vrot.slane %v1746_v45, 1  ;;  %v1039_v43 = vrot.slane %v985_v10, 4  ;;  %v1095_v61 = vrot.slane %v1001_v16, 4 }
 0x136   :  { %v1037_v23 = vrot.slane %v1036_v53, 1  ;;  %v1093_v3 = vrot.slane %v1092_v29, 1  ;;  %v946_v12 = vmin.f32 %v930_v19, %v938_v21  ;;  %v954_v17 = vmax.f32 %v930_v19, %v938_v21 }
 0x137   :  { %v1040_v13 = vadd.f32 %v1039_v43, %v985_v10  ;;  %v1096_v26 = vadd.f32 %v1095_v61, %v1001_v16  ;;  %v541_v55 = vadd.f32 %v1673_v49, %v1593_v2  ;;  %v792_v25 = vadd.f32 %v791_v38, %v790_v37 }
 0x138   :  { %v1038_v63 = vadd.f32 %v1037_v23, %v1036_v53  ;;  %v986_v1 = vmin.f32 %v946_v12, %v978_v30  ;;  %v1002_v28 = vmax.f32 %v954_v17, %v994_v59  ;;  %v798_v36 = vadd.f32 %v1719_v58, %v1633_v33 }
 0x139   :  { %v1094_v41 = vadd.f32 %v1093_v3, %v1092_v29  ;;  %v1041_v57 = vrot.slane %v1040_v13, 2  ;;  %v1097_v50 = vrot.slane %v1096_v26, 2  ;;  %v1055_v9 = vadd.f32 %v1032_v51, %v1684_v24 }
 0x13a   :  { %v1045_v20 = vrot.slane %v986_v1, 4  ;;  %v1101_v47 = vrot.slane %v1002_v28, 4  ;;  %v1056_v32 = vadd.f32 %v1038_v63, %v798_v36  ;;  %v1125_v2 = vsel %vm1124_vm0, %v1653_v31, %v1667_v46 }
 0x13b   :  { %v1042_v54 = vadd.f32 %v1041_v57, %v1040_v13  ;;  %v1098_v0 = vadd.f32 %v1097_v50, %v1096_v26  ;;  %v1127_v33 = vsel %vm1126_vm1, %v1693_v15, %v1125_v2  ;;  %v799_v31 = vadd.f32 %v1736_v35, %v541_v55 }
 0x13c   :  { %v1046_v49 = vadd.f32 %v1045_v20, %v986_v1  ;;  %v1102_v5 = vadd.f32 %v1101_v47, %v1002_v28  ;;  %v1129_v24 = vsel %vm1128_vm2, %v1727_v8, %v1127_v33  ;;  %v542_v19 = vadd.f32 %v1713_v60, %v1503_v52 }
 0x13d   :  { %v1043_v58 = vrot.slane %v1042_v54, 1  ;;  %v1099_v62 = vrot.slane %v1098_v0, 1  ;;  %v1131_v40 = vsel %vm1130_vm3, %v1055_v9, %v1129_v24  ;;  %v598_v8 = vadd.f32 %v1717_v4, %v1584_v7 }
 0x13e   :  { %v1047_v37 = vrot.slane %v1046_v49, 2  ;;  %v1103_v42 = vrot.slane %v1102_v5, 2  ;;  %v1133_v48 = vsel %vm1132_vm4, %v1056_v32, %v1131_v40  ;;  %v848_v10 = vadd.f32 %v847_v27, %v1746_v45  ;;  %v1212_v27 = vld [vmem:[%s1824_s5] ss:$0 sm:$0xff] }
 0x13f   :  { %v1100_v51 = vadd.f32 %v1099_v62, %v1098_v0  ;;  %v1044_v46 = vadd.f32 %v1043_v58, %v1042_v54  ;;  %v855_v16 = vadd.f32 %v1740_v11, %v1677_v39  ;;  %v1112_v53 = vadd.f32 %v1094_v41, %v1722_v6 }
 0x140   :  { %v1048_v22 = vadd.f32 %v1047_v37, %v1046_v49  ;;  %v1104_v15 = vadd.f32 %v1103_v42, %v1102_v5  ;;  %v1150_v29 = vsel %vm1124_vm0, %v1656_v34, %v1671_v14  ;;  %v800_v59 = vadd.f32 %v792_v25, %v542_v19  ;;  %v1211_v34 = vld [vmem:[%s1823_s4] ss:$0 sm:$0xff]  ;;  %s1215_s4 = scalar_lea.vmem %s1190_s20, 128 }
 0x141   :  { %v1057_v38 = vadd.f32 %v1044_v46, %v799_v31  ;;  %v1113_v60 = vadd.f32 %v1100_v51, %v855_v16  ;;  %v1151_v7 = vsel %vm1126_vm1, %v1700_v44, %v1150_v29  ;;  %v856_v45 = vadd.f32 %v848_v10, %v598_v8  ;;  %p1216_p0 = scmp.ne.s32.totalorder %s1190_s20, %s1215_s4  ;;  %p1221_p2 = scmp.lt.s32.totalorder %s1215_s4, %s1215_s4 }
 0x142   :  { %v1105_v30 = vrot.slane %v1104_v15, 1  ;;  %v1049_v35 = vrot.slane %v1048_v22, 1  ;;  %v1152_v39 = vsel %vm1128_vm2, %v1734_v18, %v1151_v7 }
 0x143   :  { %v1135_v52 = vsel %vm1134_vm5, %v1057_v38, %v1133_v48  ;;  %v1153_v6 = vsel %vm1130_vm3, %v1751_v56, %v1152_v39  ;;  %p1222_p3 = por %p1221_p2, %p1220_p1 }
 0x144   :  { %v1050_v4 = vadd.f32 %v1049_v35, %v1048_v22  ;;  %v1106_v21 = vadd.f32 %v1105_v30, %v1104_v15  ;;  %v1154_v44 = vsel %vm1132_vm4, %v1112_v53, %v1153_v6 }
 0x145   :  { %v1155_v18 = vsel %vm1134_vm5, %v1113_v60, %v1154_v44  ;;  %p1223_p4 = pnand %p1222_p3, %p1216_p0 }
 0x146   :  { %v1058_v11 = vadd.f32 %v1050_v4, %v800_v59  ;;  %v1114_v14 = vadd.f32 %v1106_v21, %v856_v45 }
 0x148   :  { %v1137_v43 = vsel %vm1136_vm6, %v1058_v11, %v1135_v52  ;;  %v1156_v56 = vsel %vm1136_vm6, %v1114_v14, %v1155_v18 }
 0x149   :  { %v1171_v61 = vadd.f32 %v1211_v34, %v1137_v43  ;;  %v1181_v23 = vadd.f32 %v1212_v27, %v1156_v56 }
 0x14b   :  { %1172 = vst [vmem:[#allocation4] sm:$0xff] %v1171_v61  ;;  %1182 = vst [vmem:[#allocation6] sm:$0xff] %v1181_v23 }
 0x14c   :  { %1226 = shalt.err (!%p1223_p4)
}
 0x14d   :  { %s1227_s0 = scalar_lea.hbm %s1825_s6, 128 }
 0x14e   :  { %p1228_p5 = scmp.ne.s32.totalorder %s1825_s6, %s1227_s0  ;;  %p1231_p6 = scmp.lt.u32.totalorder %s1227_s0, %s1825_s6 }
 0x150   :  { %p1233_p7 = pnand %p1231_p6, %p1228_p5 }
 0x152   :  { %1236 = shalt.err (!%p1233_p7)
}
 0x153   :  { %1192 = dma.vmem_to_hbm [thread:$0]  %s1190_s20, 128, %s1825_s6, [#allocation5]  }
 0x154   :  { %s1237_s8 = scalar_lea.vmem %s1200_s24, 128  ;;  %p1242_p9 = scmp.lt.s32.totalorder %s1200_s24, %s1200_s24 }
 0x155   :  { %p1238_p8 = scmp.ne.s32.totalorder %s1200_s24, %s1237_s8  ;;  %p1243_p10 = scmp.lt.s32.totalorder %s1237_s8, %s1237_s8 }
 0x157   :  { %p1244_p11 = por %p1243_p10, %p1242_p9 }
 0x159   :  { %p1245_p12 = pnand %p1244_p11, %p1238_p8 }
 0x15b   :  { %1248 = shalt.err (!%p1245_p12)
}
 0x15c   :  { %s1249_s11 = scalar_lea.hbm %s1826_s7, 128 }
 0x15d   :  { %p1250_p13 = scmp.ne.s32.totalorder %s1826_s7, %s1249_s11  ;;  %p1253_p0 = scmp.lt.u32.totalorder %s1249_s11, %s1826_s7 }
 0x15f   :  { %p1255_p1 = pnand %p1253_p0, %p1250_p13 }
 0x161   :  { %1258 = shalt.err (!%p1255_p1)
}
 0x162   :  { %1202 = dma.vmem_to_hbm [thread:$0]  %s1200_s24, 128, %s1826_s7, [#allocation7]  }
 0x163   :  { %1259 = dma.done.wait [#allocation5], 128  }
 0x164   :  { %1260 = vsyncadd [#allocation5], 4294967168 }
 0x165   :  { %1261 = dma.done.wait [#allocation7], 128  }
 0x166   :  { %1262 = vsyncadd [#allocation7], 4294967168 }
 0x167   :  { %1209 = vsyncpa [#allocation5], 1 }
 0x168   :  { %1210 = vsyncpa [#allocation7], 1 }

</bundles_post_ra>
